<compile_context>
chip_gen: v7x
topology: tpu7x:2x2x1
jax: 0.10.0
libtpu: 0.0.40
codegen_flags: <defaults>
</compile_context>

<pallas_src>
import functools

import jax
import jax.numpy as jnp
from jax.experimental import pallas as pl
from jax.experimental.pallas import tpu as pltpu


# ---------------------------------------------------------------------------
# Pallas kernel: one (batch_block, t) grid step of one AGCRN layer.
# ---------------------------------------------------------------------------
def _adcrnn_layer_kernel(x_ref, h0_ref, s_ref, wg_ref, bg_ref, wu_ref, bu_ref,
                         y_ref, h_scr, *, b_blk, n_nodes, hidden, ktot):
    """Shapes (f32):
      x_ref : (1, b_blk*N, Din)   current time step's input slab
      h0_ref: (b_blk*N, H)        initial hidden state for this batch block
      s_ref : (Ktot, N, N)        Chebyshev supports (resident across grid)
      wg_ref: (C, Ktot*2H)        fused gate weights, C = Din + H
      bg_ref: (1, 2H)
      wu_ref: (C, Ktot*H)         fused candidate weights
      bu_ref: (1, H)
      y_ref : (1, b_blk*N, H)     per-t output slab
      h_scr : (b_blk*N, H)        carried hidden state (VMEM scratch)
    """
    t = pl.program_id(1)

    @pl.when(t == 0)
    def _():
        h_scr[...] = h0_ref[...].astype(jnp.float32)

    x = x_ref[0].astype(jnp.float32)        # (b_blk*N, Din)
    st = h_scr[...]                         # (b_blk*N, H)

    def gconv(inp, w_ref, b_ref, out_dim):
        # sum_k S_k @ (inp @ W_k) + b  ==  sum_k (S_k @ inp) @ W_k + b
        # One fat (BN, C) @ (C, Ktot*out) matmul, then Ktot small S_k matmuls
        # per batch element of the block.
        y = jnp.dot(inp, w_ref[...], preferred_element_type=jnp.float32)
        rows = []
        for b in range(b_blk):
            acc = None
            for k in range(ktot):
                yk = y[b * n_nodes:(b + 1) * n_nodes,
                       k * out_dim:(k + 1) * out_dim]            # (N, out)
                term = jnp.dot(s_ref[k], yk,
                               preferred_element_type=jnp.float32)
                acc = term if acc is None else acc + term
            rows.append(acc)
        out = rows[0] if b_blk == 1 else jnp.concatenate(rows, axis=0)
        return out + b_ref[...]                                  # (BN, out)

    # --- gate: z, r ---------------------------------------------------------
    xs = jnp.concatenate([x, st], axis=-1)                       # (BN, C)
    z_r = jax.nn.sigmoid(gconv(xs, wg_ref, bg_ref, 2 * hidden))  # (BN, 2H)
    z = z_r[:, :hidden]
    r = z_r[:, hidden:]

    # --- candidate ----------------------------------------------------------
    zc = jnp.concatenate([x, z * st], axis=-1)                   # (BN, C)
    hc = jnp.tanh(gconv(zc, wu_ref, bu_ref, hidden))             # (BN, H)

    # --- GRU mix, carry state, emit per-t output ----------------------------
    h_new = r * st + (1.0 - r) * hc
    h_scr[...] = h_new
    y_ref[0] = h_new.astype(y_ref.dtype)


def make_layer_call(batch, b_blk, seq_len, n_nodes, dim_in, hidden, ktot,
                    dtype=jnp.float32):
    assert batch % b_blk == 0
    nb = batch // b_blk
    bn = b_blk * n_nodes
    c = dim_in + hidden
    kernel = functools.partial(_adcrnn_layer_kernel, b_blk=b_blk,
                               n_nodes=n_nodes, hidden=hidden, ktot=ktot)
    grid_spec = pltpu.PrefetchScalarGridSpec(
        num_scalar_prefetch=0,
        grid=(nb, seq_len),
        in_specs=[
            pl.BlockSpec((1, bn, dim_in), lambda bi, t: (t, bi, 0)),   # x seq
            pl.BlockSpec((bn, hidden), lambda bi, t: (bi, 0)),         # h0
            pl.BlockSpec((ktot, n_nodes, n_nodes),
                         lambda bi, t: (0, 0, 0)),                     # supports
            pl.BlockSpec((c, ktot * 2 * hidden), lambda bi, t: (0, 0)),  # Wg
            pl.BlockSpec((1, 2 * hidden), lambda bi, t: (0, 0)),       # bg
            pl.BlockSpec((c, ktot * hidden), lambda bi, t: (0, 0)),    # Wu
            pl.BlockSpec((1, hidden), lambda bi, t: (0, 0)),           # bu
        ],
        out_specs=pl.BlockSpec((1, bn, hidden), lambda bi, t: (t, bi, 0)),
        scratch_shapes=[pltpu.VMEM((bn, hidden), jnp.float32)],
    )
    return pl.pallas_call(
        kernel,
        out_shape=jax.ShapeDtypeStruct((seq_len, batch * n_nodes, hidden),
                                       dtype),
        grid_spec=grid_spec,
        compiler_params=pltpu.CompilerParams(
            dimension_semantics=("parallel", "arbitrary")),
    )


# ---------------------------------------------------------------------------
# Glue: Chebyshev support expansion, parameter init, encoder forward.
# ---------------------------------------------------------------------------
def build_cheb_supports(supports, cheb_k):
    """Replicates AGCN's support_set construction; returns (Ktot, N, N)."""
    mats = []
    for a in supports:
        ks = [jnp.eye(a.shape[0], dtype=a.dtype), a]
        for _ in range(2, cheb_k):
            ks.append(2.0 * a @ ks[-1] - ks[-2])
        mats.extend(ks)
    return jnp.stack(mats, axis=0)


def xavier_normal(key, shape, dtype=jnp.float32):
    fan_in, fan_out = shape
    std = (2.0 / (fan_in + fan_out)) ** 0.5
    return std * jax.random.normal(key, shape, dtype)


def init_agcn_params(key, dim_in_total, dim_out, cheb_k):
    ktot = 2 * cheb_k
    w = xavier_normal(key, (ktot * dim_in_total, dim_out))   # PyTorch layout
    b = jnp.zeros((1, dim_out), jnp.float32)
    return w, b


def init_encoder_params(key, node_num, dim_in, dim_out, cheb_k, num_layers):
    params = []
    ktot = 2 * cheb_k
    for i in range(num_layers):
        din = dim_in if i == 0 else dim_out
        c = din + dim_out
        key, kg, ku = jax.random.split(key, 3)
        wg, bg = init_agcn_params(kg, c, 2 * dim_out, cheb_k)   # (Ktot*C, 2H)
        wu, bu = init_agcn_params(ku, c, dim_out, cheb_k)       # (Ktot*C, H)
        # fused kernel layout: (C, Ktot*out), column block k holds W_k
        wg_t = (wg.reshape(ktot, c, 2 * dim_out)
                  .transpose(1, 0, 2).reshape(c, ktot * 2 * dim_out))
        wu_t = (wu.reshape(ktot, c, dim_out)
                  .transpose(1, 0, 2).reshape(c, ktot * dim_out))
        params.append(dict(
            din=din, wg_t=wg_t, bg=bg, wu_t=wu_t, bu=bu,
            # flat copies for the pure-JAX reference
            wg_flat=wg, wu_flat=wu,
        ))
    return params


def adcrnn_encoder_forward(x, init_state, supports, params, cheb_k, hidden,
                           batch_block=None):
    """x: (B, T, N, Din); init_state: (L, B, N, H); supports: list of (N, N)."""
    S = build_cheb_supports(supports, cheb_k)
    ktot = S.shape[0]
    B, T, N, dim_in = x.shape
    b_blk = B if batch_block is None else batch_block

    # fold (B, N) into matmul rows; time axis leading for per-t grid blocks
    cur = jnp.transpose(x, (1, 0, 2, 3)).reshape(T, B * N, dim_in)
    output_hidden = []
    for i, p in enumerate(params):
        din = p["din"]
        layer_call = make_layer_call(B, b_blk, T, N, din, hidden, ktot,
                                     dtype=x.dtype)
        h0 = init_state[i].reshape(B * N, hidden)
        y = layer_call(cur, h0, S, p["wg_t"], p["bg"], p["wu_t"], p["bu"])
        output_hidden.append(y[T - 1].reshape(B, N, hidden))
        cur = y                                     # next layer reads directly
    out_seq = cur.reshape(T, B, N, hidden).transpose(1, 0, 2, 3)
    return out_seq, output_hidden


# ---------------------------------------------------------------------------
# Pure-JAX reference (mirrors the PyTorch code) for the correctness check.
# ---------------------------------------------------------------------------
def ref_agcn(x, S, w_flat, b):
    # x: (B, N, C); S: (Ktot, N, N)
    xg = jnp.concatenate(
        [jnp.einsum('nm,bmc->bnc', S[k], x) for k in range(S.shape[0])],
        axis=-1)
    return jnp.einsum('bni,io->bno', xg, w_flat) + b[0]


def ref_cell(x, state, S, p, hidden):
    xs = jnp.concatenate([x, state], axis=-1)
    z_r = jax.nn.sigmoid(ref_agcn(xs, S, p["wg_flat"], p["bg"]))
    z, r = z_r[..., :hidden], z_r[..., hidden:]
    cand = jnp.concatenate([x, z * state], axis=-1)
    hc = jnp.tanh(ref_agcn(cand, S, p["wu_flat"], p["bu"]))
    return r * state + (1.0 - r) * hc


def ref_encoder(x, init_state, supports, params, cheb_k, hidden):
    S = build_cheb_supports(supports, cheb_k)
    current = x
    outs = []
    for i, p in enumerate(params):
        state = init_state[i]
        states = []
        for t in range(x.shape[1]):
            state = ref_cell(current[:, t], state, S, p, hidden)
            states.append(state)
        outs.append(state)
        current = jnp.stack(states, axis=1)
    return current, outs


# ---------------------------------------------------------------------------
if __name__ == "__main__":
    B, T, N = 2, 8, 16
    DIM_IN, HIDDEN = 4, 32
    CHEB_K, NUM_LAYERS = 3, 2

    key = jax.random.PRNGKey(0)
    key, kx, ka1, ka2, kp = jax.random.split(key, 5)

    x = jax.random.normal(kx, (B, T, N, DIM_IN), jnp.float32)
    # two adaptive supports (row-softmax-normalized), as in MegaCRN
    a1 = jax.nn.softmax(jax.random.normal(ka1, (N, N), jnp.float32), axis=-1)
    a2 = jax.nn.softmax(jax.random.normal(ka2, (N, N), jnp.float32), axis=-1)
    supports = [a1, a2]

    params = init_encoder_params(kp, N, DIM_IN, HIDDEN, CHEB_K, NUM_LAYERS)
    init_state = jnp.zeros((NUM_LAYERS, B, N, HIDDEN), jnp.float32)

    out_seq, out_hidden = adcrnn_encoder_forward(
        x, init_state, supports, params, CHEB_K, HIDDEN)
    out_seq = jax.block_until_ready(out_seq)
    out_hidden = [jax.block_until_ready(h) for h in out_hidden]

    # sanity check against the pure-JAX reference
    ref_seq, ref_hidden = ref_encoder(
        x, init_state, supports, params, CHEB_K, HIDDEN)
    assert out_seq.shape == (B, T, N, HIDDEN)
    assert len(out_hidden) == NUM_LAYERS
    assert jnp.allclose(out_seq, ref_seq, rtol=1e-3, atol=1e-4)
    for h, hr in zip(out_hidden, ref_hidden):
        assert h.shape == (B, N, HIDDEN)
        assert jnp.allclose(h, hr, rtol=1e-3, atol=1e-4)

    print("KERNEL_OK")
</pallas_src>

<mosaic_0001>
module attributes {stable_mosaic.version = 11 : i64} {
  func.func @_adcrnn_layer_kernel(%arg0: i32, %arg1: i32, %arg2: memref<1x32x4xf32, #tpu.memory_space<vmem>>, %arg3: memref<32x32xf32, #tpu.memory_space<vmem>>, %arg4: memref<6x16x16xf32, #tpu.memory_space<vmem>>, %arg5: memref<36x384xf32, #tpu.memory_space<vmem>>, %arg6: memref<1x64xf32, #tpu.memory_space<vmem>>, %arg7: memref<36x192xf32, #tpu.memory_space<vmem>>, %arg8: memref<1x32xf32, #tpu.memory_space<vmem>>, %arg9: memref<1x32x32xf32, #tpu.memory_space<vmem>>, %arg10: memref<32x32xf32, #tpu.memory_space<vmem>>) attributes {dimension_semantics = [#tpu.dimension_semantics<parallel>, #tpu.dimension_semantics<arbitrary>], iteration_bounds = array<i64: 1, 8>, scalar_prefetch = 0 : i64, scratch_operands = 1 : i64, tpu.core_type = #tpu.core_type<tc>, window_params = [{transform_indices = @transform_0, window_bounds = array<i64: 1, 32, 4>}, {transform_indices = @transform_1, window_bounds = array<i64: 32, 32>}, {pipeline_mode = #tpu.pipeline_mode<synchronous>, transform_indices = @transform_2, window_bounds = array<i64: 6, 16, 16>}, {pipeline_mode = #tpu.pipeline_mode<synchronous>, transform_indices = @transform_3, window_bounds = array<i64: 36, 384>}, {pipeline_mode = #tpu.pipeline_mode<synchronous>, transform_indices = @transform_4, window_bounds = array<i64: 1, 64>}, {pipeline_mode = #tpu.pipeline_mode<synchronous>, transform_indices = @transform_5, window_bounds = array<i64: 36, 192>}, {pipeline_mode = #tpu.pipeline_mode<synchronous>, transform_indices = @transform_6, window_bounds = array<i64: 1, 32>}, {transform_indices = @transform_7, window_bounds = array<i64: 1, 32, 32>}]} {
    %c0_i32 = arith.constant 0 : i32
    %0 = arith.cmpi eq, %arg1, %c0_i32 : i32
    %1 = arith.extui %0 : i1 to i32
    %c0_i32_0 = arith.constant 0 : i32
    %2 = arith.cmpi ne, %1, %c0_i32_0 : i32
    scf.if %2 {
      %c0_112 = arith.constant 0 : index
      %c0_113 = arith.constant 0 : index
      %154 = vector.load %arg3[%c0_112, %c0_113] : memref<32x32xf32, #tpu.memory_space<vmem>>, vector<32x32xf32>
      %c0_114 = arith.constant 0 : index
      %c0_115 = arith.constant 0 : index
      %155 = vector.load %arg10[%c0_114, %c0_115] : memref<32x32xf32, #tpu.memory_space<vmem>>, vector<32x32xf32>
      tpu.vector_store %arg10[%c0_114, %c0_115], %154 {strides = array<i32>} : memref<32x32xf32, #tpu.memory_space<vmem>>, vector<32x32xf32>,
    } else {
    }
    %c0 = arith.constant 0 : index
    %c0_1 = arith.constant 0 : index
    %c0_2 = arith.constant 0 : index
    %3 = vector.load %arg2[%c0, %c0_1, %c0_2] : memref<1x32x4xf32, #tpu.memory_space<vmem>>, vector<1x32x4xf32>
    %4 = vector.shape_cast %3 : vector<1x32x4xf32> to vector<32x4xf32>
    %c0_3 = arith.constant 0 : index
    %c0_4 = arith.constant 0 : index
    %5 = vector.load %arg10[%c0_3, %c0_4] : memref<32x32xf32, #tpu.memory_space<vmem>>, vector<32x32xf32>
    %6 = tpu.concatenate %4, %5 in 1 : vector<32x4xf32>, vector<32x32xf32> -> vector<32x36xf32>
    %c0_5 = arith.constant 0 : index
    %c0_6 = arith.constant 0 : index
    %7 = vector.load %arg5[%c0_5, %c0_6] : memref<36x384xf32, #tpu.memory_space<vmem>>, vector<36x384xf32>
    %cst = arith.constant dense<0.000000e+00> : vector<32x384xf32>
    %8 = tpu.matmul %6, %7, %cst {dimension_numbers = #tpu.dot_dimension_numbers<[1], [0], [0], [1], [0, 0, 1, 1], [], []>} : vector<32x36xf32>, vector<36x384xf32>, vector<32x384xf32> -> vector<32x384xf32>
    %9 = vector.extract_strided_slice %8 {offsets = [0, 0], sizes = [16, 64], strides = [1, 1]} : vector<32x384xf32> to vector<16x64xf32>
    %c0_7 = arith.constant 0 : index
    %c0_8 = arith.constant 0 : index
    %c0_9 = arith.constant 0 : index
    %10 = vector.load %arg4[%c0_7, %c0_8, %c0_9] : memref<6x16x16xf32, #tpu.memory_space<vmem>>, vector<1x16x16xf32>
    %11 = vector.shape_cast %10 : vector<1x16x16xf32> to vector<16x16xf32>
    %cst_10 = arith.constant dense<0.000000e+00> : vector<16x64xf32>
    %12 = tpu.matmul %11, %9, %cst_10 {dimension_numbers = #tpu.dot_dimension_numbers<[1], [0], [0], [1], [0, 0, 1, 1], [], []>} : vector<16x16xf32>, vector<16x64xf32>, vector<16x64xf32> -> vector<16x64xf32>
    %13 = vector.extract_strided_slice %8 {offsets = [0, 64], sizes = [16, 64], strides = [1, 1]} : vector<32x384xf32> to vector<16x64xf32>
    %c1 = arith.constant 1 : index
    %c0_11 = arith.constant 0 : index
    %c0_12 = arith.constant 0 : index
    %14 = vector.load %arg4[%c1, %c0_11, %c0_12] : memref<6x16x16xf32, #tpu.memory_space<vmem>>, vector<1x16x16xf32>
    %15 = vector.shape_cast %14 : vector<1x16x16xf32> to vector<16x16xf32>
    %cst_13 = arith.constant dense<0.000000e+00> : vector<16x64xf32>
    %16 = tpu.matmul %15, %13, %cst_13 {dimension_numbers = #tpu.dot_dimension_numbers<[1], [0], [0], [1], [0, 0, 1, 1], [], []>} : vector<16x16xf32>, vector<16x64xf32>, vector<16x64xf32> -> vector<16x64xf32>
    %17 = arith.addf %12, %16 : vector<16x64xf32>
    %18 = vector.extract_strided_slice %8 {offsets = [0, 128], sizes = [16, 64], strides = [1, 1]} : vector<32x384xf32> to vector<16x64xf32>
    %c2 = arith.constant 2 : index
    %c0_14 = arith.constant 0 : index
    %c0_15 = arith.constant 0 : index
    %19 = vector.load %arg4[%c2, %c0_14, %c0_15] : memref<6x16x16xf32, #tpu.memory_space<vmem>>, vector<1x16x16xf32>
    %20 = vector.shape_cast %19 : vector<1x16x16xf32> to vector<16x16xf32>
    %cst_16 = arith.constant dense<0.000000e+00> : vector<16x64xf32>
    %21 = tpu.matmul %20, %18, %cst_16 {dimension_numbers = #tpu.dot_dimension_numbers<[1], [0], [0], [1], [0, 0, 1, 1], [], []>} : vector<16x16xf32>, vector<16x64xf32>, vector<16x64xf32> -> vector<16x64xf32>
    %22 = arith.addf %17, %21 : vector<16x64xf32>
    %23 = vector.extract_strided_slice %8 {offsets = [0, 192], sizes = [16, 64], strides = [1, 1]} : vector<32x384xf32> to vector<16x64xf32>
    %c3 = arith.constant 3 : index
    %c0_17 = arith.constant 0 : index
    %c0_18 = arith.constant 0 : index
    %24 = vector.load %arg4[%c3, %c0_17, %c0_18] : memref<6x16x16xf32, #tpu.memory_space<vmem>>, vector<1x16x16xf32>
    %25 = vector.shape_cast %24 : vector<1x16x16xf32> to vector<16x16xf32>
    %cst_19 = arith.constant dense<0.000000e+00> : vector<16x64xf32>
    %26 = tpu.matmul %25, %23, %cst_19 {dimension_numbers = #tpu.dot_dimension_numbers<[1], [0], [0], [1], [0, 0, 1, 1], [], []>} : vector<16x16xf32>, vector<16x64xf32>, vector<16x64xf32> -> vector<16x64xf32>
    %27 = arith.addf %22, %26 : vector<16x64xf32>
    %28 = vector.extract_strided_slice %8 {offsets = [0, 256], sizes = [16, 64], strides = [1, 1]} : vector<32x384xf32> to vector<16x64xf32>
    %c4 = arith.constant 4 : index
    %c0_20 = arith.constant 0 : index
    %c0_21 = arith.constant 0 : index
    %29 = vector.load %arg4[%c4, %c0_20, %c0_21] : memref<6x16x16xf32, #tpu.memory_space<vmem>>, vector<1x16x16xf32>
    %30 = vector.shape_cast %29 : vector<1x16x16xf32> to vector<16x16xf32>
    %cst_22 = arith.constant dense<0.000000e+00> : vector<16x64xf32>
    %31 = tpu.matmul %30, %28, %cst_22 {dimension_numbers = #tpu.dot_dimension_numbers<[1], [0], [0], [1], [0, 0, 1, 1], [], []>} : vector<16x16xf32>, vector<16x64xf32>, vector<16x64xf32> -> vector<16x64xf32>
    %32 = arith.addf %27, %31 : vector<16x64xf32>
    %33 = vector.extract_strided_slice %8 {offsets = [0, 320], sizes = [16, 64], strides = [1, 1]} : vector<32x384xf32> to vector<16x64xf32>
    %c5 = arith.constant 5 : index
    %c0_23 = arith.constant 0 : index
    %c0_24 = arith.constant 0 : index
    %34 = vector.load %arg4[%c5, %c0_23, %c0_24] : memref<6x16x16xf32, #tpu.memory_space<vmem>>, vector<1x16x16xf32>
    %35 = vector.shape_cast %34 : vector<1x16x16xf32> to vector<16x16xf32>
    %cst_25 = arith.constant dense<0.000000e+00> : vector<16x64xf32>
    %36 = tpu.matmul %35, %33, %cst_25 {dimension_numbers = #tpu.dot_dimension_numbers<[1], [0], [0], [1], [0, 0, 1, 1], [], []>} : vector<16x16xf32>, vector<16x64xf32>, vector<16x64xf32> -> vector<16x64xf32>
    %37 = arith.addf %32, %36 : vector<16x64xf32>
    %38 = vector.extract_strided_slice %8 {offsets = [16, 0], sizes = [16, 64], strides = [1, 1]} : vector<32x384xf32> to vector<16x64xf32>
    %c0_26 = arith.constant 0 : index
    %c0_27 = arith.constant 0 : index
    %c0_28 = arith.constant 0 : index
    %39 = vector.load %arg4[%c0_26, %c0_27, %c0_28] : memref<6x16x16xf32, #tpu.memory_space<vmem>>, vector<1x16x16xf32>
    %40 = vector.shape_cast %39 : vector<1x16x16xf32> to vector<16x16xf32>
    %cst_29 = arith.constant dense<0.000000e+00> : vector<16x64xf32>
    %41 = tpu.matmul %40, %38, %cst_29 {dimension_numbers = #tpu.dot_dimension_numbers<[1], [0], [0], [1], [0, 0, 1, 1], [], []>} : vector<16x16xf32>, vector<16x64xf32>, vector<16x64xf32> -> vector<16x64xf32>
    %42 = vector.extract_strided_slice %8 {offsets = [16, 64], sizes = [16, 64], strides = [1, 1]} : vector<32x384xf32> to vector<16x64xf32>
    %c1_30 = arith.constant 1 : index
    %c0_31 = arith.constant 0 : index
    %c0_32 = arith.constant 0 : index
    %43 = vector.load %arg4[%c1_30, %c0_31, %c0_32] : memref<6x16x16xf32, #tpu.memory_space<vmem>>, vector<1x16x16xf32>
    %44 = vector.shape_cast %43 : vector<1x16x16xf32> to vector<16x16xf32>
    %cst_33 = arith.constant dense<0.000000e+00> : vector<16x64xf32>
    %45 = tpu.matmul %44, %42, %cst_33 {dimension_numbers = #tpu.dot_dimension_numbers<[1], [0], [0], [1], [0, 0, 1, 1], [], []>} : vector<16x16xf32>, vector<16x64xf32>, vector<16x64xf32> -> vector<16x64xf32>
    %46 = arith.addf %41, %45 : vector<16x64xf32>
    %47 = vector.extract_strided_slice %8 {offsets = [16, 128], sizes = [16, 64], strides = [1, 1]} : vector<32x384xf32> to vector<16x64xf32>
    %c2_34 = arith.constant 2 : index
    %c0_35 = arith.constant 0 : index
    %c0_36 = arith.constant 0 : index
    %48 = vector.load %arg4[%c2_34, %c0_35, %c0_36] : memref<6x16x16xf32, #tpu.memory_space<vmem>>, vector<1x16x16xf32>
    %49 = vector.shape_cast %48 : vector<1x16x16xf32> to vector<16x16xf32>
    %cst_37 = arith.constant dense<0.000000e+00> : vector<16x64xf32>
    %50 = tpu.matmul %49, %47, %cst_37 {dimension_numbers = #tpu.dot_dimension_numbers<[1], [0], [0], [1], [0, 0, 1, 1], [], []>} : vector<16x16xf32>, vector<16x64xf32>, vector<16x64xf32> -> vector<16x64xf32>
    %51 = arith.addf %46, %50 : vector<16x64xf32>
    %52 = vector.extract_strided_slice %8 {offsets = [16, 192], sizes = [16, 64], strides = [1, 1]} : vector<32x384xf32> to vector<16x64xf32>
    %c3_38 = arith.constant 3 : index
    %c0_39 = arith.constant 0 : index
    %c0_40 = arith.constant 0 : index
    %53 = vector.load %arg4[%c3_38, %c0_39, %c0_40] : memref<6x16x16xf32, #tpu.memory_space<vmem>>, vector<1x16x16xf32>
    %54 = vector.shape_cast %53 : vector<1x16x16xf32> to vector<16x16xf32>
    %cst_41 = arith.constant dense<0.000000e+00> : vector<16x64xf32>
    %55 = tpu.matmul %54, %52, %cst_41 {dimension_numbers = #tpu.dot_dimension_numbers<[1], [0], [0], [1], [0, 0, 1, 1], [], []>} : vector<16x16xf32>, vector<16x64xf32>, vector<16x64xf32> -> vector<16x64xf32>
    %56 = arith.addf %51, %55 : vector<16x64xf32>
    %57 = vector.extract_strided_slice %8 {offsets = [16, 256], sizes = [16, 64], strides = [1, 1]} : vector<32x384xf32> to vector<16x64xf32>
    %c4_42 = arith.constant 4 : index
    %c0_43 = arith.constant 0 : index
    %c0_44 = arith.constant 0 : index
    %58 = vector.load %arg4[%c4_42, %c0_43, %c0_44] : memref<6x16x16xf32, #tpu.memory_space<vmem>>, vector<1x16x16xf32>
    %59 = vector.shape_cast %58 : vector<1x16x16xf32> to vector<16x16xf32>
    %cst_45 = arith.constant dense<0.000000e+00> : vector<16x64xf32>
    %60 = tpu.matmul %59, %57, %cst_45 {dimension_numbers = #tpu.dot_dimension_numbers<[1], [0], [0], [1], [0, 0, 1, 1], [], []>} : vector<16x16xf32>, vector<16x64xf32>, vector<16x64xf32> -> vector<16x64xf32>
    %61 = arith.addf %56, %60 : vector<16x64xf32>
    %62 = vector.extract_strided_slice %8 {offsets = [16, 320], sizes = [16, 64], strides = [1, 1]} : vector<32x384xf32> to vector<16x64xf32>
    %c5_46 = arith.constant 5 : index
    %c0_47 = arith.constant 0 : index
    %c0_48 = arith.constant 0 : index
    %63 = vector.load %arg4[%c5_46, %c0_47, %c0_48] : memref<6x16x16xf32, #tpu.memory_space<vmem>>, vector<1x16x16xf32>
    %64 = vector.shape_cast %63 : vector<1x16x16xf32> to vector<16x16xf32>
    %cst_49 = arith.constant dense<0.000000e+00> : vector<16x64xf32>
    %65 = tpu.matmul %64, %62, %cst_49 {dimension_numbers = #tpu.dot_dimension_numbers<[1], [0], [0], [1], [0, 0, 1, 1], [], []>} : vector<16x16xf32>, vector<16x64xf32>, vector<16x64xf32> -> vector<16x64xf32>
    %66 = arith.addf %61, %65 : vector<16x64xf32>
    %67 = tpu.concatenate %37, %66 in 0 : vector<16x64xf32>, vector<16x64xf32> -> vector<32x64xf32>
    %c0_50 = arith.constant 0 : index
    %c0_51 = arith.constant 0 : index
    %68 = vector.load %arg6[%c0_50, %c0_51] : memref<1x64xf32, #tpu.memory_space<vmem>>, vector<1x64xf32>
    %69 = vector.broadcast %68 : vector<1x64xf32> to vector<32x64xf32>
    %70 = arith.addf %67, %69 : vector<32x64xf32>
    %71 = arith.negf %70 : vector<32x64xf32>
    %72 = math.exp %71 : vector<32x64xf32>
    %cst_52 = arith.constant 1.000000e+00 : f32
    %73 = vector.broadcast %cst_52 : f32 to vector<32x64xf32>
    %74 = arith.addf %73, %72 : vector<32x64xf32>
    %75 = arith.divf %73, %74 : vector<32x64xf32>
    %76 = vector.extract_strided_slice %75 {offsets = [0, 0], sizes = [32, 32], strides = [1, 1]} : vector<32x64xf32> to vector<32x32xf32>
    %77 = vector.extract_strided_slice %75 {offsets = [0, 32], sizes = [32, 32], strides = [1, 1]} : vector<32x64xf32> to vector<32x32xf32>
    %78 = arith.mulf %76, %5 : vector<32x32xf32>
    %79 = tpu.concatenate %4, %78 in 1 : vector<32x4xf32>, vector<32x32xf32> -> vector<32x36xf32>
    %c0_53 = arith.constant 0 : index
    %c0_54 = arith.constant 0 : index
    %80 = vector.load %arg7[%c0_53, %c0_54] : memref<36x192xf32, #tpu.memory_space<vmem>>, vector<36x192xf32>
    %cst_55 = arith.constant dense<0.000000e+00> : vector<32x192xf32>
    %81 = tpu.matmul %79, %80, %cst_55 {dimension_numbers = #tpu.dot_dimension_numbers<[1], [0], [0], [1], [0, 0, 1, 1], [], []>} : vector<32x36xf32>, vector<36x192xf32>, vector<32x192xf32> -> vector<32x192xf32>
    %82 = vector.extract_strided_slice %81 {offsets = [0, 0], sizes = [16, 32], strides = [1, 1]} : vector<32x192xf32> to vector<16x32xf32>
    %c0_56 = arith.constant 0 : index
    %c0_57 = arith.constant 0 : index
    %c0_58 = arith.constant 0 : index
    %83 = vector.load %arg4[%c0_56, %c0_57, %c0_58] : memref<6x16x16xf32, #tpu.memory_space<vmem>>, vector<1x16x16xf32>
    %84 = vector.shape_cast %83 : vector<1x16x16xf32> to vector<16x16xf32>
    %cst_59 = arith.constant dense<0.000000e+00> : vector<16x32xf32>
    %85 = tpu.matmul %84, %82, %cst_59 {dimension_numbers = #tpu.dot_dimension_numbers<[1], [0], [0], [1], [0, 0, 1, 1], [], []>} : vector<16x16xf32>, vector<16x32xf32>, vector<16x32xf32> -> vector<16x32xf32>
    %86 = vector.extract_strided_slice %81 {offsets = [0, 32], sizes = [16, 32], strides = [1, 1]} : vector<32x192xf32> to vector<16x32xf32>
    %c1_60 = arith.constant 1 : index
    %c0_61 = arith.constant 0 : index
    %c0_62 = arith.constant 0 : index
    %87 = vector.load %arg4[%c1_60, %c0_61, %c0_62] : memref<6x16x16xf32, #tpu.memory_space<vmem>>, vector<1x16x16xf32>
    %88 = vector.shape_cast %87 : vector<1x16x16xf32> to vector<16x16xf32>
    %cst_63 = arith.constant dense<0.000000e+00> : vector<16x32xf32>
    %89 = tpu.matmul %88, %86, %cst_63 {dimension_numbers = #tpu.dot_dimension_numbers<[1], [0], [0], [1], [0, 0, 1, 1], [], []>} : vector<16x16xf32>, vector<16x32xf32>, vector<16x32xf32> -> vector<16x32xf32>
    %90 = arith.addf %85, %89 : vector<16x32xf32>
    %91 = vector.extract_strided_slice %81 {offsets = [0, 64], sizes = [16, 32], strides = [1, 1]} : vector<32x192xf32> to vector<16x32xf32>
    %c2_64 = arith.constant 2 : index
    %c0_65 = arith.constant 0 : index
    %c0_66 = arith.constant 0 : index
    %92 = vector.load %arg4[%c2_64, %c0_65, %c0_66] : memref<6x16x16xf32, #tpu.memory_space<vmem>>, vector<1x16x16xf32>
    %93 = vector.shape_cast %92 : vector<1x16x16xf32> to vector<16x16xf32>
    %cst_67 = arith.constant dense<0.000000e+00> : vector<16x32xf32>
    %94 = tpu.matmul %93, %91, %cst_67 {dimension_numbers = #tpu.dot_dimension_numbers<[1], [0], [0], [1], [0, 0, 1, 1], [], []>} : vector<16x16xf32>, vector<16x32xf32>, vector<16x32xf32> -> vector<16x32xf32>
    %95 = arith.addf %90, %94 : vector<16x32xf32>
    %96 = vector.extract_strided_slice %81 {offsets = [0, 96], sizes = [16, 32], strides = [1, 1]} : vector<32x192xf32> to vector<16x32xf32>
    %c3_68 = arith.constant 3 : index
    %c0_69 = arith.constant 0 : index
    %c0_70 = arith.constant 0 : index
    %97 = vector.load %arg4[%c3_68, %c0_69, %c0_70] : memref<6x16x16xf32, #tpu.memory_space<vmem>>, vector<1x16x16xf32>
    %98 = vector.shape_cast %97 : vector<1x16x16xf32> to vector<16x16xf32>
    %cst_71 = arith.constant dense<0.000000e+00> : vector<16x32xf32>
    %99 = tpu.matmul %98, %96, %cst_71 {dimension_numbers = #tpu.dot_dimension_numbers<[1], [0], [0], [1], [0, 0, 1, 1], [], []>} : vector<16x16xf32>, vector<16x32xf32>, vector<16x32xf32> -> vector<16x32xf32>
    %100 = arith.addf %95, %99 : vector<16x32xf32>
    %101 = vector.extract_strided_slice %81 {offsets = [0, 128], sizes = [16, 32], strides = [1, 1]} : vector<32x192xf32> to vector<16x32xf32>
    %c4_72 = arith.constant 4 : index
    %c0_73 = arith.constant 0 : index
    %c0_74 = arith.constant 0 : index
    %102 = vector.load %arg4[%c4_72, %c0_73, %c0_74] : memref<6x16x16xf32, #tpu.memory_space<vmem>>, vector<1x16x16xf32>
    %103 = vector.shape_cast %102 : vector<1x16x16xf32> to vector<16x16xf32>
    %cst_75 = arith.constant dense<0.000000e+00> : vector<16x32xf32>
    %104 = tpu.matmul %103, %101, %cst_75 {dimension_numbers = #tpu.dot_dimension_numbers<[1], [0], [0], [1], [0, 0, 1, 1], [], []>} : vector<16x16xf32>, vector<16x32xf32>, vector<16x32xf32> -> vector<16x32xf32>
    %105 = arith.addf %100, %104 : vector<16x32xf32>
    %106 = vector.extract_strided_slice %81 {offsets = [0, 160], sizes = [16, 32], strides = [1, 1]} : vector<32x192xf32> to vector<16x32xf32>
    %c5_76 = arith.constant 5 : index
    %c0_77 = arith.constant 0 : index
    %c0_78 = arith.constant 0 : index
    %107 = vector.load %arg4[%c5_76, %c0_77, %c0_78] : memref<6x16x16xf32, #tpu.memory_space<vmem>>, vector<1x16x16xf32>
    %108 = vector.shape_cast %107 : vector<1x16x16xf32> to vector<16x16xf32>
    %cst_79 = arith.constant dense<0.000000e+00> : vector<16x32xf32>
    %109 = tpu.matmul %108, %106, %cst_79 {dimension_numbers = #tpu.dot_dimension_numbers<[1], [0], [0], [1], [0, 0, 1, 1], [], []>} : vector<16x16xf32>, vector<16x32xf32>, vector<16x32xf32> -> vector<16x32xf32>
    %110 = arith.addf %105, %109 : vector<16x32xf32>
    %111 = vector.extract_strided_slice %81 {offsets = [16, 0], sizes = [16, 32], strides = [1, 1]} : vector<32x192xf32> to vector<16x32xf32>
    %c0_80 = arith.constant 0 : index
    %c0_81 = arith.constant 0 : index
    %c0_82 = arith.constant 0 : index
    %112 = vector.load %arg4[%c0_80, %c0_81, %c0_82] : memref<6x16x16xf32, #tpu.memory_space<vmem>>, vector<1x16x16xf32>
    %113 = vector.shape_cast %112 : vector<1x16x16xf32> to vector<16x16xf32>
    %cst_83 = arith.constant dense<0.000000e+00> : vector<16x32xf32>
    %114 = tpu.matmul %113, %111, %cst_83 {dimension_numbers = #tpu.dot_dimension_numbers<[1], [0], [0], [1], [0, 0, 1, 1], [], []>} : vector<16x16xf32>, vector<16x32xf32>, vector<16x32xf32> -> vector<16x32xf32>
    %115 = vector.extract_strided_slice %81 {offsets = [16, 32], sizes = [16, 32], strides = [1, 1]} : vector<32x192xf32> to vector<16x32xf32>
    %c1_84 = arith.constant 1 : index
    %c0_85 = arith.constant 0 : index
    %c0_86 = arith.constant 0 : index
    %116 = vector.load %arg4[%c1_84, %c0_85, %c0_86] : memref<6x16x16xf32, #tpu.memory_space<vmem>>, vector<1x16x16xf32>
    %117 = vector.shape_cast %116 : vector<1x16x16xf32> to vector<16x16xf32>
    %cst_87 = arith.constant dense<0.000000e+00> : vector<16x32xf32>
    %118 = tpu.matmul %117, %115, %cst_87 {dimension_numbers = #tpu.dot_dimension_numbers<[1], [0], [0], [1], [0, 0, 1, 1], [], []>} : vector<16x16xf32>, vector<16x32xf32>, vector<16x32xf32> -> vector<16x32xf32>
    %119 = arith.addf %114, %118 : vector<16x32xf32>
    %120 = vector.extract_strided_slice %81 {offsets = [16, 64], sizes = [16, 32], strides = [1, 1]} : vector<32x192xf32> to vector<16x32xf32>
    %c2_88 = arith.constant 2 : index
    %c0_89 = arith.constant 0 : index
    %c0_90 = arith.constant 0 : index
    %121 = vector.load %arg4[%c2_88, %c0_89, %c0_90] : memref<6x16x16xf32, #tpu.memory_space<vmem>>, vector<1x16x16xf32>
    %122 = vector.shape_cast %121 : vector<1x16x16xf32> to vector<16x16xf32>
    %cst_91 = arith.constant dense<0.000000e+00> : vector<16x32xf32>
    %123 = tpu.matmul %122, %120, %cst_91 {dimension_numbers = #tpu.dot_dimension_numbers<[1], [0], [0], [1], [0, 0, 1, 1], [], []>} : vector<16x16xf32>, vector<16x32xf32>, vector<16x32xf32> -> vector<16x32xf32>
    %124 = arith.addf %119, %123 : vector<16x32xf32>
    %125 = vector.extract_strided_slice %81 {offsets = [16, 96], sizes = [16, 32], strides = [1, 1]} : vector<32x192xf32> to vector<16x32xf32>
    %c3_92 = arith.constant 3 : index
    %c0_93 = arith.constant 0 : index
    %c0_94 = arith.constant 0 : index
    %126 = vector.load %arg4[%c3_92, %c0_93, %c0_94] : memref<6x16x16xf32, #tpu.memory_space<vmem>>, vector<1x16x16xf32>
    %127 = vector.shape_cast %126 : vector<1x16x16xf32> to vector<16x16xf32>
    %cst_95 = arith.constant dense<0.000000e+00> : vector<16x32xf32>
    %128 = tpu.matmul %127, %125, %cst_95 {dimension_numbers = #tpu.dot_dimension_numbers<[1], [0], [0], [1], [0, 0, 1, 1], [], []>} : vector<16x16xf32>, vector<16x32xf32>, vector<16x32xf32> -> vector<16x32xf32>
    %129 = arith.addf %124, %128 : vector<16x32xf32>
    %130 = vector.extract_strided_slice %81 {offsets = [16, 128], sizes = [16, 32], strides = [1, 1]} : vector<32x192xf32> to vector<16x32xf32>
    %c4_96 = arith.constant 4 : index
    %c0_97 = arith.constant 0 : index
    %c0_98 = arith.constant 0 : index
    %131 = vector.load %arg4[%c4_96, %c0_97, %c0_98] : memref<6x16x16xf32, #tpu.memory_space<vmem>>, vector<1x16x16xf32>
    %132 = vector.shape_cast %131 : vector<1x16x16xf32> to vector<16x16xf32>
    %cst_99 = arith.constant dense<0.000000e+00> : vector<16x32xf32>
    %133 = tpu.matmul %132, %130, %cst_99 {dimension_numbers = #tpu.dot_dimension_numbers<[1], [0], [0], [1], [0, 0, 1, 1], [], []>} : vector<16x16xf32>, vector<16x32xf32>, vector<16x32xf32> -> vector<16x32xf32>
    %134 = arith.addf %129, %133 : vector<16x32xf32>
    %135 = vector.extract_strided_slice %81 {offsets = [16, 160], sizes = [16, 32], strides = [1, 1]} : vector<32x192xf32> to vector<16x32xf32>
    %c5_100 = arith.constant 5 : index
    %c0_101 = arith.constant 0 : index
    %c0_102 = arith.constant 0 : index
    %136 = vector.load %arg4[%c5_100, %c0_101, %c0_102] : memref<6x16x16xf32, #tpu.memory_space<vmem>>, vector<1x16x16xf32>
    %137 = vector.shape_cast %136 : vector<1x16x16xf32> to vector<16x16xf32>
    %cst_103 = arith.constant dense<0.000000e+00> : vector<16x32xf32>
    %138 = tpu.matmul %137, %135, %cst_103 {dimension_numbers = #tpu.dot_dimension_numbers<[1], [0], [0], [1], [0, 0, 1, 1], [], []>} : vector<16x16xf32>, vector<16x32xf32>, vector<16x32xf32> -> vector<16x32xf32>
    %139 = arith.addf %134, %138 : vector<16x32xf32>
    %140 = tpu.concatenate %110, %139 in 0 : vector<16x32xf32>, vector<16x32xf32> -> vector<32x32xf32>
    %c0_104 = arith.constant 0 : index
    %c0_105 = arith.constant 0 : index
    %141 = vector.load %arg8[%c0_104, %c0_105] : memref<1x32xf32, #tpu.memory_space<vmem>>, vector<1x32xf32>
    %142 = vector.broadcast %141 : vector<1x32xf32> to vector<32x32xf32>
    %143 = arith.addf %140, %142 : vector<32x32xf32>
    %144 = math.tanh %143 : vector<32x32xf32>
    %145 = arith.mulf %77, %5 : vector<32x32xf32>
    %cst_106 = arith.constant 1.000000e+00 : f32
    %146 = vector.broadcast %cst_106 : f32 to vector<32x32xf32>
    %147 = arith.subf %146, %77 : vector<32x32xf32>
    %148 = arith.mulf %147, %144 : vector<32x32xf32>
    %149 = arith.addf %145, %148 : vector<32x32xf32>
    %c0_107 = arith.constant 0 : index
    %c0_108 = arith.constant 0 : index
    %150 = vector.load %arg10[%c0_107, %c0_108] : memref<32x32xf32, #tpu.memory_space<vmem>>, vector<32x32xf32>
    tpu.vector_store %arg10[%c0_107, %c0_108], %149 {strides = array<i32>} : memref<32x32xf32, #tpu.memory_space<vmem>>, vector<32x32xf32>,
    %c0_109 = arith.constant 0 : index
    %c0_110 = arith.constant 0 : index
    %c0_111 = arith.constant 0 : index
    %151 = vector.load %arg9[%c0_109, %c0_110, %c0_111] : memref<1x32x32xf32, #tpu.memory_space<vmem>>, vector<1x32x32xf32>
    %152 = vector.shape_cast %151 : vector<1x32x32xf32> to vector<32x32xf32>
    %153 = vector.shape_cast %149 : vector<32x32xf32> to vector<1x32x32xf32>
    tpu.vector_store %arg9[%c0_109, %c0_110, %c0_111], %153 {strides = array<i32>} : memref<1x32x32xf32, #tpu.memory_space<vmem>>, vector<1x32x32xf32>,
    return
  }
  func.func @transform_0(%arg0: i32, %arg1: i32) -> (i32, i32, i32) {
    %c0_i32 = arith.constant 0 : i32
    %c0_i32_0 = arith.constant 0 : i32
    return %arg1, %arg0, %c0_i32 : i32, i32, i32
  }
  func.func @transform_1(%arg0: i32, %arg1: i32) -> (i32, i32) {
    %c0_i32 = arith.constant 0 : i32
    %c0_i32_0 = arith.constant 0 : i32
    return %arg0, %c0_i32 : i32, i32
  }
  func.func @transform_2(%arg0: i32, %arg1: i32) -> (i32, i32, i32) {
    %c0_i32 = arith.constant 0 : i32
    %c0_i32_0 = arith.constant 0 : i32
    %c0_i32_1 = arith.constant 0 : i32
    %c0_i32_2 = arith.constant 0 : i32
    return %c0_i32, %c0_i32_0, %c0_i32_1 : i32, i32, i32
  }
  func.func @transform_3(%arg0: i32, %arg1: i32) -> (i32, i32) {
    %c0_i32 = arith.constant 0 : i32
    %c0_i32_0 = arith.constant 0 : i32
    %c0_i32_1 = arith.constant 0 : i32
    return %c0_i32, %c0_i32_0 : i32, i32
  }
  func.func @transform_4(%arg0: i32, %arg1: i32) -> (i32, i32) {
    %c0_i32 = arith.constant 0 : i32
    %c0_i32_0 = arith.constant 0 : i32
    %c0_i32_1 = arith.constant 0 : i32
    return %c0_i32, %c0_i32_0 : i32, i32
  }
  func.func @transform_5(%arg0: i32, %arg1: i32) -> (i32, i32) {
    %c0_i32 = arith.constant 0 : i32
    %c0_i32_0 = arith.constant 0 : i32
    %c0_i32_1 = arith.constant 0 : i32
    return %c0_i32, %c0_i32_0 : i32, i32
  }
  func.func @transform_6(%arg0: i32, %arg1: i32) -> (i32, i32) {
    %c0_i32 = arith.constant 0 : i32
    %c0_i32_0 = arith.constant 0 : i32
    %c0_i32_1 = arith.constant 0 : i32
    return %c0_i32, %c0_i32_0 : i32, i32
  }
  func.func @transform_7(%arg0: i32, %arg1: i32) -> (i32, i32, i32) {
    %c0_i32 = arith.constant 0 : i32
    %c0_i32_0 = arith.constant 0 : i32
    return %arg1, %arg0, %c0_i32 : i32, i32, i32
  }
}

</mosaic_0001>

<bundles_post_ra>
// kernel: tpu_custom_call.1
= control target key start
LH: loop header
LB: loop body
LE: loop exit
PB: predicated region body
PF: predicated region fallthrough
CT: control target
= control target key end

     0   :  { %12 = vsyncpa [#allocation4], 0  ;;  %s4381_s0 = inlined_call_operand.vmem [shape: f32[8,32,4], index: 0, kind: input, shape index: {}]   ;;  %s4382_s1 = inlined_call_operand.hbm [shape: f32[32,32], index: 1, kind: input, shape index: {}]   ;;  %s4383_s2 = inlined_call_operand.vmem [shape: f32[6,16,16], index: 2, kind: input, shape index: {}]   ;;  %s4384_s3 = inlined_call_operand.vmem [shape: f32[36,384], index: 3, kind: input, shape index: {}]   ;;  %s4385_s4 = inlined_call_operand.vmem [shape: f32[1,64], index: 4, kind: input, shape index: {}]   ;;  %s4386_s5 = inlined_call_operand.vmem [shape: f32[36,192], index: 5, kind: input, shape index: {}]   ;;  %s4387_s6 = inlined_call_operand.vmem [shape: f32[1,32], index: 6, kind: input, shape index: {}]   ;;  %s4388_s7 = inlined_call_operand.hbm [shape: f32[8,32,32], index: 7, kind: output, shape index: {}]  }
   0x1   :  { %13 = vsyncpa [#allocation5], 0 }
   0x2   :  { %15 = vsyncpa [#allocation5 + $0x1], 0  ;;  %s3825_s24 = smov 0   ;;  %s3827_s25 = smov 0  }
   0x3   :  { %s3829_s26 = smov 0   ;;  %s3831_s27 = smov 0  }
   0x4   :  { %s3833_s28 = smov 0   ;;  %s3835_s29 = smov 0  }
   0x5 LB: > { %s2945_s30 = sadd.s32 4294967295, %s3772_s29   ;;  %s2946_s8 = sadd.s32 4294967294, %s3772_s29   ;;  %s3772_s29 = sphi %s3835_s29, %s21_s29   ;;  %s3768_s28 = sphi %s3833_s28, %s4411_s28   ;;  %s3764_s27 = sphi %s3831_s27, %s4410_s27   ;;  %s3760_s26 = sphi %s3829_s26, %s4409_s26   ;;  %s3756_s25 = sphi %s3827_s25, %s4408_s25   ;;  %s3752_s24 = sphi %s3825_s24, %s4407_s24  }
   0x6   : > { %s30_s9 = sadd.s32 1, %s3768_s28  ;;  %s201_s10 = sadd.s32 1, %s3760_s26 }
   0x7   : > { %p31_p0 = scmp.ge.s32.totalorder %s30_s9, 8  ;;  %p211_p1 = scmp.ne.s32.totalorder %s3760_s26, %s3756_s25 }
   0x8   : > { %p212_p2 = scmp.eq.s32.totalorder %s2945_s30, 7  ;;  %p217_p3 = scmp.ne.s32.totalorder %s3756_s25, %s3752_s24 }
   0x9   : > { %s4413_s9 = smov (%p31_p0, %s30_s9), 0  ;;  %p218_p5 = scmp.eq.s32.totalorder %s2946_s8, 7 }
   0xa   : > { %p3865_p4 = por %p212_p2, %p211_p1  ;;  %s196_s12 = ssub.s32 %s3768_s28, %s4413_s9 }
   0xb   : > { %p2947_p6 = scmp.ge.s32.totalorder %s3772_s29, 1  ;;  %p199_p7 = scmp.eq.s32.totalorder %s196_s12, 0 }
   0xc   : > { %s4396_s11 = scalar_select %p3865_p4, 1, 0 }
   0xd   : > { %p3872_p8 = por %p218_p5, %p217_p3  ;;  %p225_p9 = scmp.lt.s32.totalorder %s3772_s29, 9 }
   0xe   : > { %s3878_s14 = scalar_select %p199_p7, %s3760_s26, %s201_s10  }
   0xf   : > { %s4397_s13 = scalar_select %p3872_p8, 1, 0 }
  0x10   : > { %p3880_p10 = pnand %p2947_p6, %p225_p9  ;;  %p3884_p11 = scmp.eq.s32.totalorder %s2945_s30, 0 }
  0x11   : > { %s3774_s17 = smov [#allocation3]   ;;  %s3662_s22 = scalar_lea.hbm %s4382_s1, 512 }
  0x12   : > { %s4398_s15 = scalar_select %p3880_p10, 1, 0 }
  0x13   : > { %s4399_s16 = scalar_select %p3884_p11, 1, 0 }
  0x14   : > { %p3499_p12 = pneg %p3880_p10  ;;  %s240_s18 = sshll.u32 %s3774_s17, 4  ;;  %s241_s18 = int_to_ptr.vmem [resolvable:$true] %s240_s18 }
  0x15   : > { %p3663_p0 = scmp.ne.s32.totalorder %s4382_s1, %s3662_s22  ;;  %p3669_p5 = scmp.lt.u32.totalorder %s3662_s22, %s4382_s1 }
  0x16   : > { %p3892_p13 = pnand %p3884_p11, %p3499_p12 }
  0x18   : > { %p3664_p1 = pneg %p3892_p13 }
  0x1a   : > { %p3665_p2 = pnand %p3664_p1, %p3663_p0 }
  0x1c   : > { %p3666_p3 = pneg %p3665_p2 }
  0x1e   : > { %p3671_p6 = pnand %p3669_p5, %p3666_p3 }
  0x20   : > { %3674 = shalt.err (!%p3671_p6)
}
  0x21   : > { %s3675_s12 = scalar_lea.vmem %s241_s18, 512  ;;  %p3683_p8 = scmp.lt.s32.totalorder %s241_s18, %s241_s18 }
  0x22   : > { %p3676_p7 = scmp.ne.s32.totalorder %s241_s18, %s3675_s12  ;;  %p3684_p4 = scmp.lt.s32.totalorder %s3675_s12, %s3675_s12 }
  0x24   : > { %p3678_p9 = pnand %p3676_p7, %p3664_p1  ;;  %p3685_p11 = por %p3684_p4, %p3683_p8 }
  0x26   : > { %p3679_p12 = pneg %p3678_p9 }
  0x28   : > { %p3686_p10 = pnand %p3685_p11, %p3679_p12 }
  0x2a   : > { %3689 = shalt.err (!%p3686_p10)
}
  0x2b   : > { %s3775_s17 = smov 128   ;;  %s3776_s20 = smov 8  }
  0x2c   : > { %3502 = dma.hbm_to_vmem [thread:$0]  (!%p3892_p13), %s4382_s1, 512, %s241_s18, [#allocation4], %s3775_s17, %s3775_s17, %s3776_s20  }
  0x2d   : > { %p4401_p0 = scmp.ne.s32.totalorder %s4398_s15, 0 }
  0x2e   : > { %p4402_p2 = scmp.ne.s32.totalorder (!%p4401_p0), %s4399_s16, 0 }
  0x2f   : > { %284 = sbr.rel (%p4401_p0) target bundleno = 1787 (0x6fb), region = 48 }
  0x36   : > { %3743 = dma.done.wait (%p4402_p2), [#allocation4], 512  }
  0x37   : > { %3745 = vsyncadd (%p4402_p2), [#allocation4], 4294966784  ;;  %s4393_s22 = sand.u32 1, %s3756_s25   ;;  %p321_p4 = scmp.lt.s32.totalorder %s3764_s27, 7 }
  0x38   : > { %s2952_s19 = sshll.u32 %s4393_s22, 5  ;;  %p2955_p8 = scmp.ne.s32.totalorder %s3764_s27, 0 }
  0x39   : > { %s322_s30 = scalar_select %p321_p4, %s3764_s27, 7 }
  0x3a   : > { %s3928_s12 = scalar_lea.vmem [#allocation6], %s2952_s19  ;;  %335 = sbr.rel (%p2955_p8) target bundleno = 65 (0x41), region = 56  ;;  %v336_v0 = vld [vmem:[#allocation3] sm:$0xff] (!%p2955_p8)  ;;  %vm340_vm0 = vcmask (!%p2955_p8), 261120   ;;  %v337_v1 = vld [vmem:[#allocation3 + $0x8] sm:$0xff] (!%p2955_p8)  ;;  %v338_v2 = vld [vmem:[#allocation3 + $0x10] sm:$0xff] (!%p2955_p8) }
  0x3b   : > { %s3042_s8 = sshll.u32 %s322_s30, 5  ;;  %341 = vst.msk [vmem:[#allocation2] sm:$0xff] (!%p2955_p8), %vm340_vm0, %v336_v0  ;;  %342 = vst.msk [vmem:[#allocation2 + $0x8] sm:$0xff] (!%p2955_p8), %vm340_vm0, %v337_v1  ;;  %v339_v3 = vld [vmem:[#allocation3 + $0x18] sm:$0xff] (!%p2955_p8) }
  0x3c   : > { %s3926_s15 = scalar_lea.vmem %s4381_s0, %s3042_s8  ;;  %343 = vst.msk [vmem:[#allocation2 + $0x10] sm:$0xff] (!%p2955_p8), %vm340_vm0, %v338_v2  ;;  %344 = vst.msk [vmem:[#allocation2 + $0x18] sm:$0xff] (!%p2955_p8), %vm340_vm0, %v339_v3 }
  0x41 PF: > { %s3777_s16 = smov 4   ;;  %v375_v8 = vld [vmem:[%s4384_s3 + $0x8] sm:$0xff]  ;;  %v378_v9 = vld [vmem:[%s4384_s3 + $0x20] sm:$0xff]  ;;  %v377_v12 = vld [vmem:[%s4384_s3 + $0x18] sm:$0xff]  ;;  %v3778_v14 = vmov 0.0   ;;  %vm402_vm1 = vcmask 1043456  }
  0x42   : > { %v3931_v4 = vld [vmem:[#allocation2] sm:$0xff]  ;;  %v3933_v5 = vld [vmem:[#allocation2 + $0x8] sm:$0xff]  ;;  %v3333_v10 = vpack.c.bf16 %v378_v9, %v375_v8  ;;  %v374_v11 = vld [vmem:[%s4384_s3] sm:$0xff]  ;;  %476 = vmatprep.mubr.f32.mxu0 %v3778_v14  ;;  %vm369_vm2 = vcmask 31744   ;;  %vm389_vm3 = vcmask 293888   ;;  %vm599_vm4 = vcmask 130048  }
  0x43   : > { %v3935_v6 = vld [vmem:[#allocation2 + $0x10] sm:$0xff]  ;;  %357 = vrot.lane.b32.xlu0 %v3931_v4, %s3777_s16  ;;  %v3941_v7 = vld [vmem:[#allocation2 + $0x18] sm:$0xff]  ;;  %v381_v13 = vld [vmem:[%s4384_s3 + $0x38] sm:$0xff]  ;;  %v3335_v15 = vpack.c.bf16 %v377_v12, %v374_v11  ;;  %s4394_s23 = smov 64   ;;  %s4403_s19 = smov 64   ;;  %vm2827_vm5 = vcmask 261120  }
  0x44   : > { %361 = vrot.lane.b32.xlu1 %v3935_v6, %s3777_s16  ;;  %v384_v16 = vld [vmem:[%s4384_s3 + $0x50] sm:$0xff]  ;;  %v383_v18 = vld [vmem:[%s4384_s3 + $0x48] sm:$0xff]  ;;  %3334 = vmatprep.subr.bf16.mxu0 %v3333_v10  ;;  %v386_v24 = vld [vmem:[%s4384_s3 + $0x60] sm:$0xf]  ;;  %s3781_s30 = smov 32   ;;  %s3043_s18 = sshll.u32 %s3764_s27, 9 }
  0x45   : > { %v380_v17 = vld [vmem:[%s4384_s3 + $0x30] sm:$0xff]  ;;  %v3337_v19 = vpack.c.bf16 %v384_v16, %v381_v13  ;;  %3336 = vmatpush1.bf16.msra.mxu0 %v3335_v15  ;;  %v387_v21 = vld [vmem:[%s4384_s3 + $0x68] sm:$0xf]  ;;  %v382_v26 = vld [vmem:[%s4384_s3 + $0x40] sm:$0xff]  ;;  %s2852_s10 = sshll.u32 %s3928_s12, 4  ;;  %s4323_s17 = scalar_lea.hbm %s4388_s7, %s3043_s18  ;;  %s4325_s10 = int_to_ptr.vmem [resolvable:$true] %s2852_s10 }
  0x46   : > { %v3339_v20 = vpack.c.bf16 %v383_v18, %v380_v17  ;;  %v376_v22 = vld [vmem:[%s4384_s3 + $0x10] sm:$0xff]  ;;  %v379_v23 = vld [vmem:[%s4384_s3 + $0x28] sm:$0xff]  ;;  %v385_v27 = vld [vmem:[%s4384_s3 + $0x58] sm:$0xff]  ;;  %s4404_s27 = sand.u32 1, %s3756_s25   ;;  %s3690_s21 = scalar_lea.vmem %s4325_s10, 512 }
  0x47   : > { %359 = vrot.lane.b32.xlu0 %v3933_v5, %s3777_s16  ;;  %3338 = vmatprep.subr.bf16.mxu0 %v3337_v19  ;;  %v3341_v25 = vpack.c.bf16 %v379_v23, %v376_v22  ;;  %v3993_v28 = vld [vmem:[%s3926_s15] sm:$0xff]  ;;  %v3345_v30 = vpack.c.bf16 %v385_v27, %v382_v26  ;;  %v3999_v32 = vld [vmem:[%s3926_s15 + $0x8] sm:$0xff]  ;;  %v4003_v35 = vld [vmem:[%s3926_s15 + $0x10] sm:$0xff]  ;;  %s4335_s20 = scalar_lea.sflag [#allocation5], %s4404_s27  ;;  %p3691_p10 = scmp.ne.s32.totalorder %s4325_s10, %s3690_s21 }
  0x48   : > { %363 = vrot.lane.b32.xlu1 %v3941_v7, %s3777_s16  ;;  %v388_v37 = vld [vmem:[%s4384_s3 + $0x70] sm:$0xf]  ;;  %v4015_v40 = vld [vmem:[%s3926_s15 + $0x18] sm:$0xff]  ;;  %v4031_v42 = vld [vmem:[%s4383_s2] sm:$0xff]  ;;  %p4405_p11 = scmp.ne.s32.totalorder %s4396_s11, 0 }
  0x49   : > { %3340 = vmatpush1.bf16.msra.mxu0 %v3339_v20  ;;  %v4038_v44 = vld [vmem:[%s4383_s2 + $0x10] sm:$0xff]  ;;  %v4050_v61 = vld [vmem:[%s4383_s2 + $0x8] sm:$0xff]  ;;  %v4057_v1 = vld [vmem:[%s4383_s2 + $0x20] sm:$0xff] }
  0x4a   : > { %2956 = vmatprep.subr.msk.mxu0 %vm402_vm1, %v387_v21  ;;  %3169 = vmatprep.mubr.msk.f32.mxu1 %vm599_vm4, %v4038_v44  ;;  %v4069_v10 = vld [vmem:[%s4383_s2 + $0x28] sm:$0xff]  ;;  %v4074_v11 = vld [vmem:[%s4383_s2 + $0x30] sm:$0xff]  ;;  %v4083_v17 = vld [vmem:[%s4383_s2 + $0x18] sm:$0xff]  ;;  %p3692_p13 = pnand %p3691_p10, %p4405_p11 }
  0x4b   : > { %v4093_v26 = vld [vmem:[%s4383_s2 + $0x38] sm:$0xff] }
  0x4c   : > { %p3693_p1 = pneg %p3692_p13 }
  0x4d   : > { %2957 = vmatpush1.msk.msra.mxu0 %vm402_vm1, %v386_v24 }
  0x4e   : > { %3342 = vmatprep.subr.bf16.mxu0 %v3341_v25 }
  0xb5   : > { %v358_v29 = vpop.permute.xlu0 %357 }
  0xb6   : > { %v370_v31 = vsel %vm369_vm2, %v3993_v28, %v358_v29  ;;  %v362_v33 = vpop.permute.xlu1 %361  ;;  %v4100_v29 = vld [vmem:[%s4383_s2 + $0x40] sm:$0xff] }
  0xb7   : > { %2958 = vmatmul.mubr.msk.f32.vlgmr.msra.gmra.mrb[0].mxu0 %vm389_vm3, %v370_v31  ;;  %v372_v38 = vsel %vm369_vm2, %v4003_v35, %v362_v33 }
  0xb8   : > { %482 = vmatprep.mubr.f32.mxu0 %v3778_v14  ;;  %3344 = vmatpush3.bf16.msra.mxu0 %v3341_v25 }
  0xb9   : > { %v360_v34 = vpop.permute.xlu0 %359  ;;  %3346 = vmatprep.subr.bf16.mxu0 %v3345_v30 }
  0xba   : > { %v371_v36 = vsel %vm369_vm2, %v3999_v32, %v360_v34  ;;  %v364_v39 = vpop.permute.xlu1 %363 }
  0xbb   : > { %2959 = vmatmul.mubr.msk.f32.gmra.mrb[2].mxu0 %vm389_vm3, %v371_v36  ;;  %v373_v41 = vsel %vm369_vm2, %v4015_v40, %v364_v39 }
  0xbc   : > { %488 = vmatprep.mubr.f32.mxu0 %v3778_v14  ;;  %3348 = vmatpush3.bf16.msra.mxu0 %v3345_v30 }
  0xbd   : > { %3157 = vmatprep.subr.msk.mxu0 %vm402_vm1, %v388_v37 }
  0xbf   : > { %2960 = vmatmul.mubr.msk.f32.gmra.mrb[4].mxu0 %vm389_vm3, %v372_v38 }
  0xc0   : > { %494 = vmatprep.mubr.f32.mxu0 %v3778_v14  ;;  %3158 = vmatpush3.msk.msra.mxu0 %vm402_vm1, %v388_v37  ;;  %v4119_v37 = vld [vmem:[%s4383_s2 + $0x50] sm:$0xff] }
  0xc3   : > { %2961 = vmatmul.mubr.msk.f32.gmra.mrb[6].mxu0 %vm389_vm3, %v373_v41 }
  0xc4   : > { %3159 = vmatprep.mubr.msk.f32.mxu0 %vm389_vm3, %v370_v31 }
  0xc7   : > { %3160 = vmatmul.mubr.msk.f32.vlgmr.msra.gmra.mrb[8].mxu0 %vm389_vm3, %v371_v36  ;;  %v4112_v36 = vld [vmem:[%s4383_s2 + $0x48] sm:$0xff] }
  0xc8   : > { %3162 = vmatprep.mubr.msk.f32.mxu0 %vm389_vm3, %v372_v38 }
  0xcb   : > { %3163 = vmatmul.mubr.msk.f32.gmra.mrb[10].mxu0 %vm389_vm3, %v373_v41  ;;  %v4131_v41 = vld [vmem:[%s4383_s2 + $0x58] sm:$0xff] }
  0xcc   : > { %3218 = vmatprep.mubr.msk.f32.mxu0 %vm599_vm4, %v4031_v42 }
 0x18a   : > { %v478_v43 = vpop.f32.mrb[0].mxu0 }
 0x18b   : > { %v480_v45 = vpop.f32.mrb[1].mxu0 }
 0x18e   : > { %v484_v46 = vpop.f32.mrb[2].mxu0 }
 0x18f   : > { %v3568_v47 = vpack.i.bf16 %v484_v46, %v478_v43  ;;  %v3353_v48 = vpack.c.bf16 %v484_v46, %v478_v43  ;;  %v486_v49 = vpop.f32.mrb[3].mxu0 }
 0x190   : > { %v3573_v50 = vpack.i.bf16 %v486_v49, %v480_v45  ;;  %v4042_v51 = vpack.c.bf16 %v486_v49, %v480_v45  ;;  %v1664_v49 = vld [vmem:[%s4386_s5 + $0x8] sm:$0xff] }
 0x191   : > { %3569 = vrot.lane.b32.xlu0 %v3568_v47, %s4394_s23 }
 0x192   : > { %3574 = vrot.lane.b32.xlu1 %v3573_v50, %s4394_s23  ;;  %v490_v52 = vpop.f32.mrb[4].mxu0  ;;  %v1666_v50 = vld [vmem:[%s4386_s5 + $0x18] sm:$0xff] }
 0x193   : > { %v492_v53 = vpop.f32.mrb[5].mxu0 }
 0x196   : > { %v496_v54 = vpop.f32.mrb[6].mxu0 }
 0x197   : > { %v3588_v55 = vpack.i.bf16 %v496_v54, %v490_v52  ;;  %v3377_v56 = vpack.c.bf16 %v496_v54, %v490_v52  ;;  %v498_v57 = vpop.f32.mrb[7].mxu0  ;;  %v3397_v52 = vpack.c.bf16 %v1666_v50, %v1664_v49  ;;  %v1668_v54 = vld [vmem:[%s4386_s5 + $0x28] sm:$0xff] }
 0x198   : > { %v3578_v58 = vpack.i.bf16 %v498_v57, %v492_v53  ;;  %v3381_v59 = vpack.c.bf16 %v498_v57, %v492_v53  ;;  %v1665_v53 = vld [vmem:[%s4386_s5 + $0x10] sm:$0xff] }
 0x199   : > { %3378 = vmatprep.subr.bf16.mxu0 %v3377_v56 }
 0x19a   : > { %3579 = vrot.lane.b32.xlu0 %v3578_v58, %s4394_s23  ;;  %v3161_v60 = vpop.f32.mrb[8].mxu0  ;;  %3380 = vmatpush3.bf16.msra.mxu0 %v3377_v56  ;;  %v1667_v58 = vld [vmem:[%s4386_s5 + $0x20] sm:$0xff] }
 0x19b   : > { %v567_v62 = vpop.f32.mrb[9].mxu0  ;;  %3382 = vmatprep.subr.bf16.mxu0 %v3381_v59 }
 0x19c   : > { %v3583_v63 = vpack.i.bf16 %v3161_v60, %v567_v62  ;;  %v4052_v0 = vpack.c.bf16 %v3161_v60, %v567_v62 }
 0x19d   : > { %3219 = vmatmul.mubr.msk.f32.vlgmr.msra.gmra.mrb[12].mxu0 %vm599_vm4, %v4050_v61 }
 0x19e   : > { %3584 = vrot.lane.b32.xlu1 %v3583_v63, %s4394_s23  ;;  %v3164_v2 = vpop.f32.mrb[10].mxu0  ;;  %3589 = vrot.lane.b32.xlu0 %v3588_v55, %s4394_s23  ;;  %v1670_v55 = vld [vmem:[%s4386_s5 + $0x38] sm:$0xff] }
 0x19f   : > { %v577_v3 = vpop.f32.mrb[11].mxu0  ;;  %3384 = vmatpush3.bf16.msra.mxu0 %v3381_v59  ;;  %3225 = vmatprep.mubr.msk.f32.mxu0 %vm599_vm4, %v4057_v1  ;;  %v3401_v57 = vpack.c.bf16 %v1670_v55, %v1668_v54  ;;  %v1669_v59 = vld [vmem:[%s4386_s5 + $0x30] sm:$0xff] }
 0x1a0   : > { %v3593_v8 = vpack.i.bf16 %v3164_v2, %v577_v3  ;;  %v3389_v9 = vpack.c.bf16 %v3164_v2, %v577_v3  ;;  %v3403_v60 = vpack.c.bf16 %v1669_v59, %v1667_v58 }
 0x1a2   : > { %3594 = vrot.lane.b32.xlu1 %v3593_v8, %s4394_s23 }
 0x1a5   : > { %3226 = vmatmul.mubr.msk.f32.vlgmr.msra.gmra.mrb[12].mxu0 %vm599_vm4, %v4069_v10 }
 0x1a6   : > { %3232 = vmatprep.mubr.msk.f32.mxu0 %vm599_vm4, %v4074_v11 }
 0x203   : > { %v3570_v12 = vpop.permute.xlu0 %3569 }
 0x204   : > { %v3572_v13 = vunpack.i.h.bf16 %v3570_v12  ;;  %v3571_v15 = vunpack.i.l.bf16 %v3570_v12  ;;  %v3575_v18 = vpop.permute.xlu1 %3574 }
 0x205   : > { %v3577_v23 = vunpack.i.h.bf16 %v3575_v18  ;;  %v3576_v24 = vunpack.i.l.bf16 %v3575_v18 }
 0x206   : > { %v3349_v16 = vpack.c.bf16 %v3572_v13, %v3571_v15 }
 0x207   : > { %v3361_v27 = vpack.c.bf16 %v3577_v23, %v3576_v24 }
 0x208   : > { %3350 = vmatprep.subr.bf16.mxu1 %v3349_v16 }
 0x209   : > { %3352 = vmatpush3.bf16.msra.mxu1 %v3349_v16 }
 0x20a   : > { %3354 = vmatprep.subr.bf16.mxu1 %v3353_v48 }
 0x20c   : > { %3170 = vmatmul.mubr.msk.f32.vlgmr.msra.gmra.mrb[0].mxu1 %vm599_vm4, %v4083_v17  ;;  %v3580_v19 = vpop.permute.xlu0 %3579 }
 0x20d   : > { %v3582_v20 = vunpack.i.h.bf16 %v3580_v19  ;;  %v3581_v21 = vunpack.i.l.bf16 %v3580_v19  ;;  %3356 = vmatpush3.bf16.msra.mxu1 %v3353_v48  ;;  %3176 = vmatprep.mubr.msk.f32.mxu1 %vm599_vm4, %v4031_v42 }
 0x20e   : > { %3358 = vmatprep.subr.bf16.mxu1 %v4042_v51 }
 0x20f   : > { %v3385_v22 = vpack.c.bf16 %v3582_v20, %v3581_v21 }
 0x210   : > { %v3585_v25 = vpop.permute.xlu1 %3584  ;;  %v3590_v45 = vpop.permute.xlu0 %3589 }
 0x211   : > { %3386 = vmatprep.subr.bf16.mxu0 %v3385_v22  ;;  %v3587_v38 = vunpack.i.h.bf16 %v3585_v25  ;;  %v3586_v39 = vunpack.i.l.bf16 %v3585_v25  ;;  %v3592_v46 = vunpack.i.h.bf16 %v3590_v45  ;;  %v3591_v47 = vunpack.i.l.bf16 %v3590_v45 }
 0x212   : > { %3388 = vmatpush3.bf16.msra.mxu0 %v3385_v22 }
 0x213   : > { %3390 = vmatprep.subr.bf16.mxu0 %v3389_v9  ;;  %v3369_v43 = vpack.c.bf16 %v3587_v38, %v3586_v39  ;;  %v3373_v48 = vpack.c.bf16 %v3592_v46, %v3591_v47 }
 0x214   : > { %3177 = vmatmul.mubr.msk.f32.vlgmr.msra.gmra.mrb[0].mxu1 %vm599_vm4, %v4050_v61  ;;  %v3595_v30 = vpop.permute.xlu1 %3594 }
 0x215   : > { %3360 = vmatpush3.bf16.msra.mxu1 %v4042_v51  ;;  %3233 = vmatmul.mubr.msk.f32.vlgmr.msra.gmra.mrb[12].mxu0 %vm599_vm4, %v4093_v26  ;;  %v3597_v31 = vunpack.i.h.bf16 %v3595_v30  ;;  %v3596_v33 = vunpack.i.l.bf16 %v3595_v30  ;;  %v1663_v51 = vld [vmem:[%s4386_s5] sm:$0xff] }
 0x216   : > { %3362 = vmatprep.subr.bf16.mxu1 %v3361_v27  ;;  %3392 = vmatpush3.bf16.msra.mxu0 %v3389_v9  ;;  %v3399_v56 = vpack.c.bf16 %v1665_v53, %v1663_v51 }
 0x217   : > { %3183 = vmatprep.mubr.msk.f32.mxu1 %vm599_vm4, %v4057_v1  ;;  %3239 = vmatprep.mubr.msk.f32.mxu0 %vm599_vm4, %v4100_v29  ;;  %v3393_v34 = vpack.c.bf16 %v3597_v31, %v3596_v33  ;;  %v1672_v31 = vld [vmem:[%s4386_s5 + $0x48] sm:$0xf]  ;;  %v1671_v33 = vld [vmem:[%s4386_s5 + $0x40] sm:$0xf] }
 0x219   : > { %3394 = vmatprep.subr.bf16.mxu0 %v3393_v34 }
 0x21c   : > { %3184 = vmatmul.mubr.msk.f32.vlgmr.msra.gmra.mrb[0].mxu1 %vm599_vm4, %v4069_v10 }
 0x21d   : > { %3364 = vmatpush3.bf16.msra.mxu1 %v3361_v27  ;;  %3240 = vmatmul.mubr.msk.f32.vlgmr.msra.gmra.mrb[12].mxu0 %vm599_vm4, %v4112_v36 }
 0x21e   : > { %3366 = vmatprep.subr.bf16.mxu1 %v4052_v0  ;;  %3396 = vmatpush3.bf16.msra.mxu0 %v3393_v34 }
 0x21f   : > { %3190 = vmatprep.mubr.msk.f32.mxu1 %vm599_vm4, %v4074_v11  ;;  %3246 = vmatprep.mubr.msk.f32.mxu0 %vm599_vm4, %v4119_v37 }
 0x224   : > { %3191 = vmatmul.mubr.msk.f32.vlgmr.msra.gmra.mrb[0].mxu1 %vm599_vm4, %v4093_v26 }
 0x225   : > { %3368 = vmatpush3.bf16.msra.mxu1 %v4052_v0  ;;  %3247 = vmatmul.mubr.msk.f32.vlgmr.msra.gmra.mrb[12].mxu0 %vm599_vm4, %v4131_v41  ;;  %v3001_v0 = vld [vmem:[%s4385_s4] ss:$0 sm:$0xff] }
 0x226   : > { %3370 = vmatprep.subr.bf16.mxu1 %v3369_v43  ;;  %3197 = vmatprep.mubr.msk.f32.mxu1 %vm599_vm4, %v4100_v29 }
 0x227   : > { %3253 = vmatprep.mubr.msk.f32.mxu0 %vm599_vm4, %v4038_v44 }
 0x22c   : > { %3198 = vmatmul.mubr.msk.f32.vlgmr.msra.gmra.mrb[0].mxu1 %vm599_vm4, %v4112_v36 }
 0x22d   : > { %3372 = vmatpush3.bf16.msra.mxu1 %v3369_v43  ;;  %3204 = vmatprep.mubr.msk.f32.mxu1 %vm599_vm4, %v4119_v37 }
 0x22e   : > { %3374 = vmatprep.subr.bf16.mxu1 %v3373_v48 }
 0x234   : > { %3205 = vmatmul.mubr.msk.f32.vlgmr.msra.gmra.mrb[0].mxu1 %vm599_vm4, %v4131_v41 }
 0x235   : > { %3376 = vmatpush3.bf16.msra.mxu1 %v3373_v48  ;;  %3211 = vmatprep.mubr.msk.f32.mxu1 %vm599_vm4, %v4038_v44 }
 0x236   : > { %3398 = vmatprep.subr.bf16.mxu1 %v3397_v52 }
 0x238   : > { %3212 = vmatmul.mubr.msk.f32.vlgmr.msra.gmra.mrb[2].mxu1 %vm599_vm4, %v4083_v17 }
 0x239   : > { %1755 = vmatprep.mubr.f32.mxu1 %v3778_v14  ;;  %3400 = vmatpush1.bf16.msra.mxu1 %v3399_v56 }
 0x23a   : > { %3402 = vmatprep.subr.bf16.mxu1 %v3401_v57 }
 0x23d   : > { %3404 = vmatpush1.bf16.msra.mxu1 %v3403_v60 }
 0x23e   : > { %3006 = vmatprep.subr.msk.mxu1 %vm402_vm1, %v1672_v31 }
 0x241   : > { %3007 = vmatpush1.msk.msra.mxu1 %vm402_vm1, %v1671_v33 }
 0x2f8   : > { %v3248_v62 = vpop.f32.mrb[12].mxu0 }
 0x2f9   : > { %v1593_v63 = vpop.f32.mrb[13].mxu0 }
 0x307   : > { %v3206_v2 = vpop.f32.mrb[0].mxu1 }
 0x308   : > { %v1612_v3 = vadd.f32 %v3206_v2, %v3001_v0  ;;  %v1111_v8 = vpop.f32.mrb[1].mxu1 }
 0x309   : > { %v1611_v9 = vadd.f32 %v3001_v0, %v1111_v8 }
 0x30a   : > { %v3003_v12 = vmul.f32 -1.442695, %v1612_v3 }
 0x30b   : > { %v3002_v13 = vmul.f32 -1.442695, %v1611_v9  ;;  %v3213_v15 = vpop.f32.mrb[2].mxu1 }
 0x30c   : > { %3638 = vpow2.f32 %v3003_v12  ;;  %v3453_v16 = vadd.f32 %v3248_v62, %v3213_v15  ;;  %v1196_v18 = vpop.f32.mrb[3].mxu1 }
 0x30d   : > { %3640 = vpow2.f32 %v3002_v13  ;;  %v3454_v19 = vadd.f32 %v1593_v63, %v1196_v18 }
 0x30e   : > { %v1614_v20 = vadd.f32 %v3453_v16, %v3001_v0 }
 0x30f   : > { %v1613_v21 = vadd.f32 %v3454_v19, %v3001_v0 }
 0x310   : > { %v3005_v22 = vmul.f32 -1.442695, %v1614_v20 }
 0x311   : > { %v3004_v23 = vmul.f32 -1.442695, %v1613_v21 }
 0x312   : > { %3642 = vpow2.f32 %v3005_v22 }
 0x313   : > { %3644 = vpow2.f32 %v3004_v23 }
 0x316   : > { %v3639_v24 = vpop.eup %3638 }
 0x317   : > { %v3641_v25 = vpop.eup %3640  ;;  %v1628_v27 = vadd.f32 1.0, %v3639_v24 }
 0x318   : > { %v1627_v30 = vadd.f32 1.0, %v3641_v25 }
 0x319   : > { %3646 = vrcp.f32 %v1628_v27 }
 0x31a   : > { %3648 = vrcp.f32 %v1627_v30 }
 0x31c   : > { %v3643_v34 = vpop.eup %3642 }
 0x31d   : > { %v3645_v38 = vpop.eup %3644  ;;  %v1630_v39 = vadd.f32 1.0, %v3643_v34 }
 0x31e   : > { %v1629_v43 = vadd.f32 1.0, %v3645_v38 }
 0x31f   : > { %3650 = vrcp.f32 %v1630_v39 }
 0x320   : > { %3652 = vrcp.f32 %v1629_v43 }
 0x323   : > { %v4188_v45 = vpop.eup %3646 }
 0x324   : > { %v4190_v46 = vpop.eup %3648  ;;  %v1640_v47 = vmul.f32 %v4188_v45, %v3933_v5 }
 0x325   : > { %v1639_v48 = vmul.f32 %v4190_v46, %v3931_v4 }
 0x326   : > { %1649 = vrot.lane.b32.xlu1 %v1640_v47, %s3777_s16 }
 0x327   : > { %1647 = vrot.lane.b32.xlu0 %v1639_v48, %s3777_s16 }
 0x329   : > { %v4198_v49 = vpop.eup %3650 }
 0x32a   : > { %v4200_v50 = vpop.eup %3652  ;;  %v1642_v51 = vmul.f32 %v4198_v49, %v3941_v7 }
 0x32b   : > { %v1641_v52 = vmul.f32 %v4200_v50, %v3935_v6 }
 0x32c   : > { %1653 = vrot.lane.b32.xlu1 %v1642_v51, %s3777_s16 }
 0x32d   : > { %1651 = vrot.lane.b32.xlu0 %v1641_v52, %s3777_s16  ;;  %s3780_s16 = smov 96  }
 0x398   : > { %v1650_v55 = vpop.permute.xlu1 %1649 }
 0x399   : > { %v1648_v53 = vpop.permute.xlu0 %1647  ;;  %v1660_v56 = vsel %vm369_vm2, %v3999_v32, %v1650_v55 }
 0x39a   : > { %v1659_v54 = vsel %vm369_vm2, %v3993_v28, %v1648_v53 }
 0x39b   : > { %3008 = vmatmul.mubr.msk.f32.vlgmr.msra.gmra.mrb[4].mxu1 %vm389_vm3, %v1659_v54 }
 0x39c   : > { %1761 = vmatprep.mubr.f32.mxu1 %v3778_v14 }
 0x39e   : > { %v1654_v59 = vpop.permute.xlu1 %1653 }
 0x39f   : > { %3009 = vmatmul.mubr.msk.f32.gmra.mrb[6].mxu1 %vm389_vm3, %v1660_v56  ;;  %v1652_v57 = vpop.permute.xlu0 %1651  ;;  %v1662_v28 = vsel %vm369_vm2, %v4015_v40, %v1654_v59 }
 0x3a0   : > { %1767 = vmatprep.mubr.f32.mxu1 %v3778_v14  ;;  %v1661_v58 = vsel %vm369_vm2, %v4003_v35, %v1652_v57 }
 0x3a3   : > { %3010 = vmatmul.mubr.msk.f32.gmra.mrb[8].mxu1 %vm389_vm3, %v1661_v58 }
 0x3a4   : > { %1773 = vmatprep.mubr.f32.mxu1 %v3778_v14 }
 0x3a7   : > { %3011 = vmatmul.mubr.msk.f32.gmra.mrb[10].mxu1 %vm389_vm3, %v1662_v28 }
 0x3a8   : > { %3295 = vmatprep.mubr.msk.f32.mxu1 %vm599_vm4, %v4038_v44 }
 0x46e   : > { %v1757_v32 = vpop.f32.mrb[4].mxu1 }
 0x46f   : > { %v1759_v60 = vpop.f32.mrb[5].mxu1 }
 0x472   : > { %v1763_v62 = vpop.f32.mrb[6].mxu1 }
 0x473   : > { %v1765_v63 = vpop.f32.mrb[7].mxu1  ;;  %v3598_v0 = vpack.i.bf16 %v1763_v62, %v1757_v32  ;;  %v3409_v2 = vpack.c.bf16 %v1763_v62, %v1757_v32 }
 0x474   : > { %v3628_v35 = vpack.i.bf16 %v1765_v63, %v1759_v60  ;;  %v4225_v3 = vpack.c.bf16 %v1765_v63, %v1759_v60 }
 0x475   : > { %3599 = vrot.lane.b32.xlu0 %v3598_v0, %s3780_s16 }
 0x476   : > { %v1769_v14 = vpop.f32.mrb[8].mxu1 }
 0x477   : > { %v1771_v8 = vpop.f32.mrb[9].mxu1 }
 0x479   : > { %3609 = vrot.lane.b32.xlu0 %v3598_v0, %s4403_s19 }
 0x47a   : > { %v1775_v40 = vpop.f32.mrb[10].mxu1 }
 0x47b   : > { %v1777_v9 = vpop.f32.mrb[11].mxu1  ;;  %v3603_v12 = vpack.i.bf16 %v1775_v40, %v1769_v14  ;;  %v3433_v44 = vpack.c.bf16 %v1775_v40, %v1769_v14 }
 0x47c   : > { %v3633_v13 = vpack.i.bf16 %v1777_v9, %v1771_v8  ;;  %v4229_v15 = vpack.c.bf16 %v1777_v9, %v1771_v8 }
 0x47d   : > { %3619 = vrot.lane.b32.xlu0 %v3598_v0, %s3781_s30  ;;  %3604 = vrot.lane.b32.xlu1 %v3603_v12, %s3780_s16 }
 0x481   : > { %3629 = vrot.lane.b32.xlu0 %v3628_v35, %s3780_s16  ;;  %3614 = vrot.lane.b32.xlu1 %v3603_v12, %s4403_s19 }
 0x485   : > { %2767 = vrot.lane.b32.xlu0 %v3931_v4, %s3781_s30  ;;  %3624 = vrot.lane.b32.xlu1 %v3603_v12, %s3781_s30 }
 0x489   : > { %2771 = vrot.lane.b32.xlu0 %v3935_v6, %s3781_s30  ;;  %3634 = vrot.lane.b32.xlu1 %v3633_v13, %s3780_s16 }
 0x48d   : > { %2769 = vrot.lane.b32.xlu1 %v3933_v5, %s3781_s30 }
 0x491   : > { %2773 = vrot.lane.b32.xlu1 %v3941_v7, %s3781_s30 }
 0x4e7   : > { %v3600_v16 = vpop.permute.xlu0 %3599 }
 0x4e8   : > { %v3602_v18 = vunpack.i.h.bf16 %v3600_v16  ;;  %v3601_v19 = vunpack.i.l.bf16 %v3600_v16 }
 0x4ea   : > { %v3405_v20 = vpack.c.bf16 %v3602_v18, %v3601_v19  ;;  %v2785_v18 = vsub.f32 1.0, %v4200_v50 }
 0x4eb   : > { %v3610_v21 = vpop.permute.xlu0 %3609 }
 0x4ec   : > { %v3612_v22 = vunpack.i.h.bf16 %v3610_v21  ;;  %v3611_v4 = vunpack.i.l.bf16 %v3610_v21  ;;  %3406 = vmatprep.subr.bf16.mxu0 %v3405_v20 }
 0x4ed   : > { %3408 = vmatpush3.bf16.msra.mxu0 %v3405_v20 }
 0x4ee   : > { %3410 = vmatprep.subr.bf16.mxu0 %v3409_v2  ;;  %v3413_v6 = vpack.c.bf16 %v3612_v22, %v3611_v4 }
 0x4ef   : > { %v3605_v23 = vpop.permute.xlu1 %3604  ;;  %v3620_v5 = vpop.permute.xlu0 %3619 }
 0x4f0   : > { %v3607_v24 = vunpack.i.h.bf16 %v3605_v23  ;;  %v3606_v25 = vunpack.i.l.bf16 %v3605_v23  ;;  %3254 = vmatmul.mubr.msk.f32.vlgmr.msra.gmra.mrb[14].mxu0 %vm599_vm4, %v4083_v17  ;;  %v3622_v30 = vunpack.i.h.bf16 %v3620_v5  ;;  %v3621_v31 = vunpack.i.l.bf16 %v3620_v5 }
 0x4f1   : > { %3412 = vmatpush3.bf16.msra.mxu0 %v3409_v2  ;;  %3260 = vmatprep.mubr.msk.f32.mxu0 %vm599_vm4, %v4031_v42  ;;  %v2784_v2 = vsub.f32 1.0, %v4188_v45 }
 0x4f2   : > { %v3429_v7 = vpack.c.bf16 %v3607_v24, %v3606_v25  ;;  %3414 = vmatprep.subr.bf16.mxu0 %v3413_v6  ;;  %v3417_v38 = vpack.c.bf16 %v3622_v30, %v3621_v31 }
 0x4f3   : > { %v3615_v27 = vpop.permute.xlu1 %3614 }
 0x4f4   : > { %v3617_v33 = vunpack.i.h.bf16 %v3615_v27  ;;  %v3616_v34 = vunpack.i.l.bf16 %v3615_v27  ;;  %3430 = vmatprep.subr.bf16.mxu1 %v3429_v7 }
 0x4f5   : > { %3432 = vmatpush3.bf16.msra.mxu1 %v3429_v7 }
 0x4f6   : > { %3434 = vmatprep.subr.bf16.mxu1 %v3433_v44  ;;  %v3437_v39 = vpack.c.bf16 %v3617_v33, %v3616_v34 }
 0x4f7   : > { %v3625_v43 = vpop.permute.xlu1 %3624 }
 0x4f8   : > { %3261 = vmatmul.mubr.msk.f32.vlgmr.msra.gmra.mrb[14].mxu0 %vm599_vm4, %v4050_v61  ;;  %3296 = vmatmul.mubr.msk.f32.vlgmr.msra.gmra.mrb[12].mxu1 %vm599_vm4, %v4083_v17  ;;  %v3627_v47 = vunpack.i.h.bf16 %v3625_v43  ;;  %v3626_v48 = vunpack.i.l.bf16 %v3625_v43  ;;  %v3630_v17 = vpop.permute.xlu0 %3629 }
 0x4f9   : > { %3416 = vmatpush3.bf16.msra.mxu0 %v3413_v6  ;;  %3436 = vmatpush3.bf16.msra.mxu1 %v3433_v44  ;;  %v3631_v52 = vunpack.i.l.bf16 %v3630_v17 }
 0x4fa   : > { %3418 = vmatprep.subr.bf16.mxu0 %v3417_v38  ;;  %3438 = vmatprep.subr.bf16.mxu1 %v3437_v39  ;;  %v3441_v51 = vpack.c.bf16 %v3627_v47, %v3626_v48 }
 0x4fb   : > { %3302 = vmatprep.mubr.msk.f32.mxu1 %vm599_vm4, %v4031_v42  ;;  %3267 = vmatprep.mubr.msk.f32.mxu0 %vm599_vm4, %v4057_v1  ;;  %v3632_v42 = vunpack.i.h.bf16 %v3630_v17 }
 0x4fc   : > { %v2768_v62 = vpop.permute.xlu0 %2767 }
 0x4fd   : > { %v3425_v53 = vpack.c.bf16 %v3632_v42, %v3631_v52  ;;  %v2779_v9 = vmul.f32 %v4190_v46, %v2768_v62 }
 0x500   : > { %3268 = vmatmul.mubr.msk.f32.vlgmr.msra.gmra.mrb[14].mxu0 %vm599_vm4, %v4069_v10  ;;  %3303 = vmatmul.mubr.msk.f32.vlgmr.msra.gmra.mrb[12].mxu1 %vm599_vm4, %v4050_v61  ;;  %v3635_v61 = vpop.permute.xlu1 %3634  ;;  %v2772_v0 = vpop.permute.xlu0 %2771 }
 0x501   : > { %3420 = vmatpush3.bf16.msra.mxu0 %v3417_v38  ;;  %3440 = vmatpush3.bf16.msra.mxu1 %v3437_v39  ;;  %v3636_v54 = vunpack.i.l.bf16 %v3635_v61  ;;  %v2781_v20 = vmul.f32 %v4200_v50, %v2772_v0 }
 0x502   : > { %3422 = vmatprep.subr.bf16.mxu0 %v4225_v3  ;;  %3442 = vmatprep.subr.bf16.mxu1 %v3441_v51 }
 0x503   : > { %3274 = vmatprep.mubr.msk.f32.mxu0 %vm599_vm4, %v4074_v11  ;;  %3309 = vmatprep.mubr.msk.f32.mxu1 %vm599_vm4, %v4057_v1  ;;  %v3637_v1 = vunpack.i.h.bf16 %v3635_v61 }
 0x504   : > { %v2770_v60 = vpop.permute.xlu1 %2769 }
 0x505   : > { %v3449_v55 = vpack.c.bf16 %v3637_v1, %v3636_v54  ;;  %v2780_v14 = vmul.f32 %v4188_v45, %v2770_v60 }
 0x508   : > { %3275 = vmatmul.mubr.msk.f32.vlgmr.msra.gmra.mrb[14].mxu0 %vm599_vm4, %v4093_v26  ;;  %3310 = vmatmul.mubr.msk.f32.vlgmr.msra.gmra.mrb[12].mxu1 %vm599_vm4, %v4069_v10  ;;  %v3036_v10 = vld [vmem:[%s4387_s6] ss:$0 sm:$0xff]  ;;  %v2774_v63 = vpop.permute.xlu1 %2773 }
 0x509   : > { %3424 = vmatpush3.bf16.msra.mxu0 %v4225_v3  ;;  %3444 = vmatpush3.bf16.msra.mxu1 %v3441_v51  ;;  %v2783_v3 = vsub.f32 1.0, %v4190_v46  ;;  %v2782_v45 = vmul.f32 %v4198_v49, %v2774_v63 }
 0x50a   : > { %3426 = vmatprep.subr.bf16.mxu0 %v3425_v53  ;;  %3446 = vmatprep.subr.bf16.mxu1 %v4229_v15 }
 0x50b   : > { %3281 = vmatprep.mubr.msk.f32.mxu0 %vm599_vm4, %v4100_v29  ;;  %3316 = vmatprep.mubr.msk.f32.mxu1 %vm599_vm4, %v4074_v11 }
 0x510   : > { %3282 = vmatmul.mubr.msk.f32.vlgmr.msra.gmra.mrb[14].mxu0 %vm599_vm4, %v4112_v36  ;;  %3317 = vmatmul.mubr.msk.f32.vlgmr.msra.gmra.mrb[12].mxu1 %vm599_vm4, %v4093_v26 }
 0x511   : > { %3428 = vmatpush3.bf16.msra.mxu0 %v3425_v53  ;;  %3448 = vmatpush3.bf16.msra.mxu1 %v4229_v15  ;;  %v2786_v15 = vsub.f32 1.0, %v4198_v49 }
 0x512   : > { %3450 = vmatprep.subr.bf16.mxu1 %v3449_v55  ;;  %3288 = vmatprep.mubr.msk.f32.mxu0 %vm599_vm4, %v4119_v37 }
 0x513   : > { %3323 = vmatprep.mubr.msk.f32.mxu1 %vm599_vm4, %v4100_v29 }
 0x518   : > { %3289 = vmatmul.mubr.msk.f32.vlgmr.msra.gmra.mrb[14].mxu0 %vm599_vm4, %v4131_v41  ;;  %3324 = vmatmul.mubr.msk.f32.vlgmr.msra.gmra.mrb[12].mxu1 %vm599_vm4, %v4112_v36 }
 0x519   : > { %3452 = vmatpush3.bf16.msra.mxu1 %v3449_v55  ;;  %3330 = vmatprep.mubr.msk.f32.mxu1 %vm599_vm4, %v4119_v37 }
 0x520   : > { %3331 = vmatmul.mubr.msk.f32.vlgmr.msra.gmra.mrb[12].mxu1 %vm599_vm4, %v4131_v41 }
 0x5eb   : > { %v3290_v11 = vpop.f32.mrb[14].mxu0 }
 0x5ec   : > { %v2760_v26 = vadd.f32 %v3290_v11, %v3036_v10  ;;  %v2255_v29 = vpop.f32.mrb[15].mxu0 }
 0x5ed   : > { %v2759_v56 = vadd.f32 %v3036_v10, %v2255_v29 }
 0x5ee   : > { %3654 = vtanh.f32 %v2760_v26 }
 0x5ef   : > { %3656 = vtanh.f32 %v2759_v56 }
 0x5f3   : > { %v3332_v57 = vpop.f32.mrb[12].mxu1 }
 0x5f4   : > { %v2762_v58 = vadd.f32 %v3332_v57, %v3036_v10  ;;  %v2741_v36 = vpop.f32.mrb[13].mxu1 }
 0x5f5   : > { %v2761_v59 = vadd.f32 %v3036_v10, %v2741_v36 }
 0x5f6   : > { %3658 = vtanh.f32 %v2762_v58 }
 0x5f7   : > { %3660 = vtanh.f32 %v2761_v59 }
 0x5f8   : > { %v3655_v37 = vpop.eup %3654 }
 0x5f9   : > { %v3657_v28 = vpop.eup %3656  ;;  %2793 = vrot.lane.b32.xlu1 %v3655_v37, %s3781_s30 }
 0x5fa   : > { %2791 = vrot.lane.b32.xlu0 %v3657_v28, %s3781_s30 }
 0x600   : > { %v3659_v41 = vpop.eup %3658 }
 0x601   : > { %v3661_v32 = vpop.eup %3660  ;;  %2797 = vrot.lane.b32.xlu1 %v3659_v41, %s3781_s30 }
 0x602   : > { %2795 = vrot.lane.b32.xlu0 %v3661_v32, %s3781_s30 }
 0x66b   : > { %v2794_v35 = vpop.permute.xlu1 %2793 }
 0x66c   : > { %v2804_v8 = vmul.f32 %v2794_v35, %v2784_v2  ;;  %v2792_v40 = vpop.permute.xlu0 %2791 }
 0x66d   : > { %v2803_v12 = vmul.f32 %v2792_v40, %v2783_v3 }
 0x66e   : > { %v2808_v44 = vadd.f32 %v2804_v8, %v2780_v14 }
 0x66f   : > { %v2807_v13 = vadd.f32 %v2803_v12, %v2779_v9 }
 0x670   : > { %2817 = vrot.lane.b32.xlu1 %v2808_v44, %s3780_s16 }
 0x671   : > { %2815 = vrot.lane.b32.xlu0 %v2807_v13, %s3780_s16 }
 0x673   : > { %v2798_v16 = vpop.permute.xlu1 %2797 }
 0x674   : > { %v2806_v19 = vmul.f32 %v2798_v16, %v2786_v15  ;;  %v2796_v46 = vpop.permute.xlu0 %2795 }
 0x675   : > { %v2805_v21 = vmul.f32 %v2796_v46, %v2785_v18 }
 0x676   : > { %v2810_v22 = vadd.f32 %v2806_v19, %v2782_v45 }
 0x677   : > { %v2809_v4 = vadd.f32 %v2805_v21, %v2781_v20 }
 0x678   : > { %2821 = vrot.lane.b32.xlu1 %v2810_v22, %s3780_s16 }
 0x679   : > { %2819 = vrot.lane.b32.xlu0 %v2809_v4, %s3780_s16  ;;  %s3782_s16 = smov [#allocation6]  }
 0x67a   : > { %s3694_s19 = sshll.u32 %s3782_s16, 4  ;;  %s3695_s19 = int_to_ptr.vmem [resolvable:$false] %s3694_s19 }
 0x67b   : > { %s3696_s30 = scalar_lea.vmem %s3695_s19, 1024  ;;  %p3697_p3 = scmp.lt.s32.totalorder %s4325_s10, %s3695_s19 }
 0x67c   : > { %p3698_p5 = scmp.lt.s32.totalorder %s3696_s30, %s3690_s21 }
 0x67e   : > { %p3699_p6 = por %p3698_p5, %p3697_p3 }
 0x680   : > { %p3700_p7 = pnand %p3699_p6, %p3693_p1 }
 0x6e2   : > { %v2818_v23 = vpop.permute.xlu1 %2817 }
 0x6e3   : > { %2829 = vst.msk [vmem:[#allocation2 + $0x8] sm:$0xff] %vm2827_vm5, %v2818_v23  ;;  %2833 = vst.msk [vmem:[%s3928_s12 + $0x8] sm:$0xff] %vm2827_vm5, %v2818_v23  ;;  %v2816_v49 = vpop.permute.xlu0 %2815 }
 0x6e4   : > { %2828 = vst.msk [vmem:[#allocation2] sm:$0xff] %vm2827_vm5, %v2816_v49  ;;  %2832 = vst.msk [vmem:[%s3928_s12] sm:$0xff] %vm2827_vm5, %v2816_v49 }
 0x6ea   : > { %v2822_v50 = vpop.permute.xlu1 %2821 }
 0x6eb   : > { %2831 = vst.msk [vmem:[#allocation2 + $0x18] sm:$0xff] %vm2827_vm5, %v2822_v50  ;;  %2835 = vst.msk [vmem:[%s3928_s12 + $0x18] sm:$0xff] %vm2827_vm5, %v2822_v50  ;;  %v2820_v6 = vpop.permute.xlu0 %2819 }
 0x6ec   : > { %2830 = vst.msk [vmem:[#allocation2 + $0x10] sm:$0xff] %vm2827_vm5, %v2820_v6  ;;  %2834 = vst.msk [vmem:[%s3928_s12 + $0x10] sm:$0xff] %vm2827_vm5, %v2820_v6 }
 0x6ed   : > { %3703 = shalt.err (!%p3700_p7)
}
 0x6ee   : > { %s3704_s12 = scalar_lea.hbm %s4323_s17, 512  ;;  %s3708_s18 = scalar_lea.hbm %s4388_s7, 4096 }
 0x6ef   : > { %p3705_p9 = scmp.ne.s32.totalorder %s4323_s17, %s3704_s12  ;;  %p3709_p2 = scmp.lt.u32.totalorder %s4323_s17, %s4388_s7 }
 0x6f0   : > { %p3710_p4 = scmp.lt.u32.totalorder %s3708_s18, %s3704_s12  ;;  %p3712_p10 = scmp.lt.u32.totalorder %s3704_s12, %s4323_s17 }
 0x6f1   : > { %p3706_p12 = pnand %p3705_p9, %p4405_p11 }
 0x6f2   : > { %p3711_p8 = por %p3710_p4, %p3709_p2 }
 0x6f3   : > { %p3707_p0 = pneg %p3706_p12 }
 0x6f4   : > { %p3713_p13 = por %p3712_p10, %p3711_p8 }
 0x6f6   : > { %p3714_p1 = pnand %p3713_p13, %p3707_p0 }
 0x6f8   : > { %3717 = shalt.err (!%p3714_p1)
}
 0x6f9   : > { %s3783_s27 = smov 128   ;;  %s3784_s21 = smov 8  }
 0x6fa   : > { %3497 = dma.vmem_to_hbm [thread:$0]  (%p4405_p11), %s4325_s10, 512, %s4323_s17, %s4335_s20, %s3783_s27, %s3783_s27, %s3784_s21  }
 0x6fb PF: > { %p3509_p3 = scmp.ge.s32.totalorder %s3772_s29, 2  ;;  %s2867_s16 = sand.u32 1, %s3752_s24  }
 0x6fc   : > { %p4406_p5 = scmp.ne.s32.totalorder %s4397_s13, 0  ;;  %s2868_s19 = scalar_lea.sflag [#allocation5], %s2867_s16 }
 0x6fe   : > { %p3504_p6 = pnand %p3509_p3, %p4406_p5 }
 0x700   : > { %3747 = dma.done.wait (!%p3504_p6), %s2868_s19, 512  }
 0x701   : > { %3749 = vsyncadd (!%p3504_p6), %s2868_s19, 4294966784  ;;  %s21_s29 = sadd.s32 1, %s3772_s29   ;;  %s4407_s24 = smov %s3756_s25 }
 0x702   : > { %p18_p7 = scmp.ge.s32.totalorder %s21_s29, 10   ;;  %s4408_s25 = smov %s3760_s26 }
 0x703   : > { %s4409_s26 = smov %s3878_s14  ;;  %s4410_s27 = smov %s3768_s28 }
 0x704   : > { %s4411_s28 = smov %s4413_s9  ;;  %20 = sbr.rel (!%p18_p7) target bundleno = 5 (0x5), region = 98 }
 0x70b   :  { %2873 = vsyncpa [#allocation4], 1 }
 0x70c   :  { %2875 = vsyncpa [#allocation4 + $0x1], 1 }
 0x70d   :  { %2876 = vsyncpa [#allocation5], 1 }
 0x70e   :  { %2878 = vsyncpa [#allocation5 + $0x1], 1 }

</bundles_post_ra>
